<compile_context>
chip_gen: v5e
topology: v5e:2x2
jax: 0.10.0
libtpu: 0.0.40
codegen_flags: <defaults>
</compile_context>

<pallas_src>
import functools

import jax
import jax.numpy as jnp
from jax.experimental import pallas as pl
from jax.experimental.pallas import tpu as pltpu


def _round_up(a, b):
    return ((a + b - 1) // b) * b


def _cdiv(a, b):
    return (a + b - 1) // b


# --------------------------------------------------------------------------- #
# Pallas kernel: complex contraction over input channels, one (mode tile, b)   #
# --------------------------------------------------------------------------- #
def _spectral_mul_kernel(xr_ref, xi_ref, xs_ref, wr_ref, wi_ref,
                         or_ref, oi_ref, ws_ref, wd_ref, *wr32,
                         Ci, Co, co_tile, bcast_stride0):
    """out[o, m] = sum_i x[i, m] * w[i, o, m]   (complex, per lane m).

    xr/xi/xs : (Ci, TM)      real / imag / (real+imag) of x_ft, batch b
    wr/wi    : (Ci, Co, TM)  spectral weights (block resident across b)
    or/oi    : (Co, TM)      real / imag of out_ft, batch b
    ws/wd    : (Ci, Co, TM)  f32 scratch: wr+wi, wi-wr  (filled at b == 0)
    wr32     : optional (Ci, Co, TM) f32 scratch with the hoisted cast of wr
               (only allocated when operands are stored in bf16)

    3-multiply complex MAC:  k1 = wr*(xr+xi);  real += k1 - xi*(wr+wi);
                             imag += k1 + xr*(wi-wr)
    """
    b = pl.program_id(1)
    TM = or_ref.shape[-1]
    hoist_wr = len(wr32) > 0
    wr_f32 = wr32[0] if hoist_wr else wr_ref

    # Weight prep runs once per mode tile: the weight block is identical for
    # every b, and b is an "arbitrary" grid axis so b == 0 executes first.
    @pl.when(b == 0)
    def _prep():
        wr = wr_ref[...].astype(jnp.float32)
        wi = wi_ref[...].astype(jnp.float32)
        ws_ref[...] = wr + wi
        wd_ref[...] = wi - wr
        if hoist_wr:
            wr32[0][...] = wr

    for co0 in range(0, Co, co_tile):

        def mac(i, acc):
            acc_r, acc_i = acc
            if bcast_stride0:
                # stride-0 sublane broadcast of x row i across co_tile rows
                # (vld slot has slack; keeps the VALU for the MACs).
                xr_b = xr_ref[pl.ds(i, co_tile, stride=0)].astype(jnp.float32)
                xi_b = xi_ref[pl.ds(i, co_tile, stride=0)].astype(jnp.float32)
                xs_b = xs_ref[pl.ds(i, co_tile, stride=0)].astype(jnp.float32)
            else:
                # Fallback: each (1, TM) row is consumed by exactly one multiply,
                # so only one broadcast per plane per (b, i) is materialized.
                xr_b = xr_ref[pl.ds(i, 1)].astype(jnp.float32)
                xi_b = xi_ref[pl.ds(i, 1)].astype(jnp.float32)
                xs_b = xs_ref[pl.ds(i, 1)].astype(jnp.float32)
            wr_i = wr_f32[i, co0:co0 + co_tile, :].astype(jnp.float32)
            ws_i = ws_ref[i, co0:co0 + co_tile, :]
            wd_i = wd_ref[i, co0:co0 + co_tile, :]
            k1 = wr_i * xs_b
            acc_r = acc_r + (k1 - xi_b * ws_i)
            acc_i = acc_i + (k1 + xr_b * wd_i)
            return acc_r, acc_i

        acc0 = (jnp.zeros((co_tile, TM), jnp.float32),
                jnp.zeros((co_tile, TM), jnp.float32))
        if Ci <= 16:                     # small: full unroll, static slices
            acc_r, acc_i = acc0
            for i in range(Ci):
                acc_r, acc_i = mac(i, (acc_r, acc_i))
        else:                            # large: bounded live ranges / compile
            acc_r, acc_i = jax.lax.fori_loop(0, Ci, mac, acc0, unroll=8)

        or_ref[co0:co0 + co_tile, :] = acc_r.astype(or_ref.dtype)
        oi_ref[co0:co0 + co_tile, :] = acc_i.astype(oi_ref.dtype)


def _spectral_multiply_pallas(xr, xi, xs, wr, wi, *, tm, vmem_limit_bytes,
                              bcast_stride0):
    """xr/xi/xs: (B, Ci, mt_pad); wr/wi: (Ci, Co, mt_pad) -> (B, Co, mt_pad) x2 f32."""
    B, Ci, mt_pad = xr.shape
    _, Co, _ = wr.shape
    assert mt_pad % tm == 0 and tm % 128 == 0, (mt_pad, tm)
    co_tile = _pick_co_tile(Co, tm)
    hoist_wr = wr.dtype != jnp.float32
    n_scratch = 3 if hoist_wr else 2

    kernel = functools.partial(_spectral_mul_kernel, Ci=Ci, Co=Co,
                               co_tile=co_tile, bcast_stride0=bcast_stride0)
    x_spec = pl.BlockSpec((None, Ci, tm), lambda m, b: (b, 0, m))
    w_spec = pl.BlockSpec((Ci, Co, tm), lambda m, b: (0, 0, m))   # same block ∀ b
    o_spec = pl.BlockSpec((None, Co, tm), lambda m, b: (b, 0, m))

    return pl.pallas_call(
        kernel,
        out_shape=(jax.ShapeDtypeStruct((B, Co, mt_pad), jnp.float32),
                   jax.ShapeDtypeStruct((B, Co, mt_pad), jnp.float32)),
        grid=(mt_pad // tm, B),
        in_specs=[x_spec, x_spec, x_spec, w_spec, w_spec],
        out_specs=(o_spec, o_spec),
        scratch_shapes=[pltpu.VMEM((Ci, Co, tm), jnp.float32)] * n_scratch,
        compiler_params=pltpu.CompilerParams(
            # Mode tiles are independent ("parallel" -> megacore split on v7x).
            # The batch axis must stay "arbitrary": b == 0 runs first per mode
            # tile and fills the ws/wd (and wr32) weight scratch.
            dimension_semantics=("parallel", "arbitrary"),
            vmem_limit_bytes=vmem_limit_bytes,
            # Let XLA fuse the real/imag/pad/(xr+xi) glue into the operands.
            allow_input_fusion=[True] * 5),
    )(xr, xi, xs, wr, wi)


# --------------------------------------------------------------------------- #
# Layout selection, capability probe and one-time weight packing               #
# --------------------------------------------------------------------------- #
def _device_defaults():
    """Per-generation tile target / VMEM budget (conservative when unknown)."""
    kind = ""
    try:
        kind = jax.devices()[0].device_kind.lower()
    except Exception:
        pass
    big_vmem = ("v7" not in kind) and any(
        t in kind for t in ("v5 lite", "v5e", "v5litepod", "v6"))
    if big_vmem:
        # 128 MiB VMEM parts (v5e / v6e): fewer, larger mode tiles; the explicit
        # 64 MiB limit also overrides v5e's 16 MiB scoped default.
        return {"tm_target": 1024, "vmem_budget_bytes": 48 << 20,
                "vmem_limit_bytes": 64 << 20}
    # v7x (64 MiB VMEM / TC) and unknown parts: stay inside the 32 MiB scoped
    # default and keep a ~20 MiB working-set budget.
    return {"tm_target": 512, "vmem_budget_bytes": 20 << 20,
            "vmem_limit_bytes": 32 << 20}


def _pick_co_tile(Co, tm):
    """Largest Co chunk whose two f32 accumulators stay within ~128 KiB of vregs."""
    limit = max(8, (128 * 1024) // (2 * 4 * tm))
    if Co <= limit:
        return Co
    t = (limit // 8) * 8
    while t >= 8 and Co % t != 0:
        t -= 8
    return t if t >= 8 else Co


def _stride0_broadcast_supported():
    """Probe whether this Pallas/Mosaic build supports stride-0 sublane-broadcast
    loads (x_ref[pl.ds(r, n, stride=0)]); fall back to implicit broadcasting."""
    try:
        def k(x_ref, o_ref):
            o_ref[...] = x_ref[pl.ds(0, 8, stride=0)]
        probe = pl.pallas_call(
            k, out_shape=jax.ShapeDtypeStruct((8, 128), jnp.float32))
        x = jnp.arange(8 * 128, dtype=jnp.float32).reshape(8, 128)
        y = jax.block_until_ready(probe(x))
        return bool(jnp.allclose(y, jnp.broadcast_to(x[0:1], (8, 128))))
    except Exception:
        return False


def spectral_layout(B, Ci, Co, modes, *, operand_dtype=jnp.float32,
                    tm_target=None, vmem_budget_bytes=None,
                    vmem_limit_bytes=None, min_mode_tiles=2):
    """Pick the mode-tile width (multiple of 128), padded mode length and the
    vmem limit, accounting for operand/out/scratch dtypes separately."""
    d = _device_defaults()
    tm_target = tm_target or d["tm_target"]
    vmem_budget_bytes = vmem_budget_bytes or d["vmem_budget_bytes"]
    vmem_limit_bytes = vmem_limit_bytes or d["vmem_limit_bytes"]
    ebytes = jnp.dtype(operand_dtype).itemsize
    m1, m2, m3 = modes
    Mt = 4 * m1 * m2 * m3
    ci_p, co_p = max(Ci, 8), max(Co, 8)          # sublane padding in VMEM
    n_scratch = 2 if ebytes == 4 else 3          # ws, wd (+ hoisted wr cast)

    def vmem_bytes(tm):
        x_b = 2 * 3 * ci_p * tm * ebytes          # xr/xi/xs, double-buffered
        w_b = 2 * 2 * Ci * co_p * tm * ebytes     # wr/wi,    double-buffered
        o_b = 2 * 2 * co_p * tm * 4               # f32 outs, double-buffered
        s_b = n_scratch * Ci * co_p * tm * 4      # f32 scratch (single)
        return x_b + w_b + o_b + s_b

    # Keep >= min_mode_tiles grid steps on the "parallel" mode axis so the
    # second v7x TensorCore has work even when the whole mode axis would fit.
    tm_cap = max(128, _round_up(_cdiv(Mt, min_mode_tiles), 128))
    tm = min(max(128, _round_up(tm_target, 128)), tm_cap)
    while tm > 128 and vmem_bytes(tm) > vmem_budget_bytes:
        tm -= 128
    mt_pad = _round_up(Mt, tm)
    return mt_pad, tm, vmem_limit_bytes


def pack_spectral_weights(weights, mt_pad, compute_dtype=jnp.float32):
    """4 x complex (Ci, Co, m1, m2, m3) -> (Ci, Co, mt_pad) real & imag planes.

    Done once at parameter-setup time.  compute_dtype=jnp.bfloat16 halves the
    weight HBM traffic (the kernel still accumulates in f32) — loosen the
    validation tolerance accordingly.
    """
    Ci, Co, m1, m2, m3 = weights[0].shape
    M = m1 * m2 * m3
    wc = jnp.concatenate([w.reshape(Ci, Co, M) for w in weights], axis=-1)  # (Ci,Co,4M)
    pad = ((0, 0), (0, 0), (0, mt_pad - 4 * M))
    wr = jnp.pad(jnp.real(wc).astype(compute_dtype), pad)
    wi = jnp.pad(jnp.imag(wc).astype(compute_dtype), pad)
    return wr, wi


# --------------------------------------------------------------------------- #
# Forward pass                                                                  #
# --------------------------------------------------------------------------- #
def spectral_conv3d(x, wr, wi, *, modes, tm, vmem_limit_bytes, bcast_stride0):
    """x: (B, Cin, D, H, W) float32 (NCDHW).  wr/wi: packed (Cin, Cout, mt_pad)."""
    m1, m2, m3 = modes
    B, Ci, D, H, W = x.shape
    _, Co, mt_pad = wr.shape
    M = m1 * m2 * m3
    Mt = 4 * M
    Wf = W // 2 + 1
    assert 2 * m1 <= D and 2 * m2 <= H and m3 <= Wf, "modes exceed spatial extent"

    # TODO(synk): rfftn/irfftn have no Pallas TPU primitive; they stay in XLA.
    x_ft = jnp.fft.rfftn(x, axes=(-3, -2, -1))                    # (B,Ci,D,H,Wf) c64

    corners = (
        x_ft[:, :, :m1, :m2, :m3],            # (low D,  low H)
        x_ft[:, :, D - m1:, :m2, :m3],        # (high D, low H)
        x_ft[:, :, :m1, H - m2:, :m3],        # (low D,  high H)
        x_ft[:, :, D - m1:, H - m2:, :m3],    # (high D, high H)
    )
    xc = jnp.concatenate([c.reshape(B, Ci, M) for c in corners], axis=-1)  # (B,Ci,4M)
    pad = ((0, 0), (0, 0), (0, mt_pad - Mt))
    xr = jnp.pad(jnp.real(xc).astype(wr.dtype), pad)
    xi = jnp.pad(jnp.imag(xc).astype(wr.dtype), pad)
    xs = xr + xi                       # Karatsuba x-side sum (fused into operands)

    our, oui = _spectral_multiply_pallas(
        xr, xi, xs, wr, wi, tm=tm, vmem_limit_bytes=vmem_limit_bytes,
        bcast_stride0=bcast_stride0)

    oc = jax.lax.complex(our[..., :Mt], oui[..., :Mt]).reshape(B, Co, 4, m1, m2, m3)

    # Assemble out_ft with concatenations (single fused construction — no full
    # zero-init + four scatter updates).
    zeros = lambda *s: jnp.zeros(s, dtype=oc.dtype)
    low_d = jnp.concatenate(
        [oc[:, :, 0], zeros(B, Co, m1, H - 2 * m2, m3), oc[:, :, 2]], axis=3)
    high_d = jnp.concatenate(
        [oc[:, :, 1], zeros(B, Co, m1, H - 2 * m2, m3), oc[:, :, 3]], axis=3)
    out_ft = jnp.concatenate(
        [low_d, zeros(B, Co, D - 2 * m1, H, m3), high_d], axis=2)
    out_ft = jnp.concatenate([out_ft, zeros(B, Co, D, H, Wf - m3)], axis=4)
    return jnp.fft.irfftn(out_ft, s=(D, H, W), axes=(-3, -2, -1))


def spectral_conv3d_reference(x, weights, modes):
    """Pure-JAX reference (mirrors the PyTorch forward) for validation."""
    m1, m2, m3 = modes
    B, Ci, D, H, W = x.shape
    Co = weights[0].shape[1]
    x_ft = jnp.fft.rfftn(x, axes=(-3, -2, -1))
    Wf = W // 2 + 1

    def mul(inp, w):
        return jnp.einsum('bixyz,ioxyz->boxyz', inp, w,
                          precision=jax.lax.Precision.HIGHEST)

    out_ft = jnp.zeros((B, Co, D, H, Wf), dtype=jnp.complex64)
    out_ft = out_ft.at[:, :, :m1, :m2, :m3].set(
        mul(x_ft[:, :, :m1, :m2, :m3], weights[0]))
    out_ft = out_ft.at[:, :, D - m1:, :m2, :m3].set(
        mul(x_ft[:, :, D - m1:, :m2, :m3], weights[1]))
    out_ft = out_ft.at[:, :, :m1, H - m2:, :m3].set(
        mul(x_ft[:, :, :m1, H - m2:, :m3], weights[2]))
    out_ft = out_ft.at[:, :, D - m1:, H - m2:, :m3].set(
        mul(x_ft[:, :, D - m1:, H - m2:, :m3], weights[3]))
    return jnp.fft.irfftn(out_ft, s=(D, H, W), axes=(-3, -2, -1))


if __name__ == "__main__":
    key = jax.random.PRNGKey(0)
    B, Ci, Co = 2, 4, 4
    D, H, W = 16, 16, 16
    modes = (8, 8, 8)                 # Mt = 4*8*8*8 = 2048 retained modes
    scale = 1.0 / (Ci * Co)

    keys = jax.random.split(key, 5)
    x = jax.random.normal(keys[0], (B, Ci, D, H, W), dtype=jnp.float32)

    def init_w(k):
        kr, ki = jax.random.split(k)
        shape = (Ci, Co) + modes
        re = scale * jax.random.uniform(kr, shape, dtype=jnp.float32)
        im = scale * jax.random.uniform(ki, shape, dtype=jnp.float32)
        return (re + 1j * im).astype(jnp.complex64)

    weights = tuple(init_w(keys[i]) for i in range(1, 5))

    # Layout + capability probe + one-time weight packing.  Use
    # compute_dtype=jnp.bfloat16 at production channel counts to halve HBM
    # traffic (loosen the tolerance); f32 here for a tight check vs reference.
    mt_pad, tm, vmem_limit = spectral_layout(B, Ci, Co, modes,
                                             operand_dtype=jnp.float32)
    bcast0 = _stride0_broadcast_supported()
    wr, wi = pack_spectral_weights(weights, mt_pad, compute_dtype=jnp.float32)

    fwd = jax.jit(functools.partial(
        spectral_conv3d, modes=modes, tm=tm, vmem_limit_bytes=vmem_limit,
        bcast_stride0=bcast0))
    out = jax.block_until_ready(fwd(x, wr, wi))

    ref = spectral_conv3d_reference(x, weights, modes)
    assert out.shape == (B, Co, D, H, W)
    err = float(jnp.max(jnp.abs(out - ref)))
    assert jnp.allclose(out, ref, atol=2e-4, rtol=2e-4), err

    print("KERNEL_OK")
</pallas_src>

<mosaic_0001>
module attributes {stable_mosaic.version = 11 : i64} {
  func.func @k(%arg0: memref<8x128xf32, #tpu.memory_space<vmem>>, %arg1: memref<8x128xf32, #tpu.memory_space<vmem>>) attributes {dimension_semantics = [], scalar_prefetch = 0 : i64, scratch_operands = 0 : i64, tpu.core_type = #tpu.core_type<tc>} {
    %c0 = arith.constant 0 : index
    %c0_0 = arith.constant 0 : index
    %0 = tpu.strided_load %arg0[%c0, %c0_0] {strides = array<i32: 0, 1>} : memref<8x128xf32, #tpu.memory_space<vmem>>, vector<8x128xf32>
    %c0_1 = arith.constant 0 : index
    %c0_2 = arith.constant 0 : index
    %1 = vector.load %arg1[%c0_1, %c0_2] : memref<8x128xf32, #tpu.memory_space<vmem>>, vector<8x128xf32>
    tpu.vector_store %arg1[%c0_1, %c0_2], %0 {strides = array<i32>} : memref<8x128xf32, #tpu.memory_space<vmem>>, vector<8x128xf32>,
    return
  }
}

module attributes {stable_mosaic.version = 11 : i64} {
  func.func @_spectral_mul_kernel(%arg0: i32, %arg1: i32, %arg2: memref<1x4x512xf32, #tpu.memory_space<vmem>>, %arg3: memref<1x4x512xf32, #tpu.memory_space<vmem>>, %arg4: memref<1x4x512xf32, #tpu.memory_space<vmem>>, %arg5: memref<4x4x512xf32, #tpu.memory_space<vmem>>, %arg6: memref<4x4x512xf32, #tpu.memory_space<vmem>>, %arg7: memref<1x4x512xf32, #tpu.memory_space<vmem>>, %arg8: memref<1x4x512xf32, #tpu.memory_space<vmem>>, %arg9: memref<4x4x512xf32, #tpu.memory_space<vmem>>, %arg10: memref<4x4x512xf32, #tpu.memory_space<vmem>>) attributes {dimension_semantics = [#tpu.dimension_semantics<parallel>, #tpu.dimension_semantics<arbitrary>], iteration_bounds = array<i64: 4, 2>, scalar_prefetch = 0 : i64, scratch_operands = 2 : i64, tpu.core_type = #tpu.core_type<tc>, window_params = [{transform_indices = @transform_0, window_bounds = array<i64: 1, 4, 512>}, {transform_indices = @transform_1, window_bounds = array<i64: 1, 4, 512>}, {transform_indices = @transform_2, window_bounds = array<i64: 1, 4, 512>}, {transform_indices = @transform_3, window_bounds = array<i64: 4, 4, 512>}, {transform_indices = @transform_4, window_bounds = array<i64: 4, 4, 512>}, {transform_indices = @transform_5, window_bounds = array<i64: 1, 4, 512>}, {transform_indices = @transform_6, window_bounds = array<i64: 1, 4, 512>}]} {
    %c0_i32 = arith.constant 0 : i32
    %0 = arith.cmpi eq, %arg1, %c0_i32 : i32
    %1 = arith.extui %0 : i1 to i32
    %c0_i32_0 = arith.constant 0 : i32
    %2 = arith.cmpi ne, %1, %c0_i32_0 : i32
    scf.if %2 {
      %c0_76 = arith.constant 0 : index
      %c0_77 = arith.constant 0 : index
      %c0_78 = arith.constant 0 : index
      %99 = vector.load %arg5[%c0_76, %c0_77, %c0_78] : memref<4x4x512xf32, #tpu.memory_space<vmem>>, vector<4x4x512xf32>
      %c0_79 = arith.constant 0 : index
      %c0_80 = arith.constant 0 : index
      %c0_81 = arith.constant 0 : index
      %100 = vector.load %arg6[%c0_79, %c0_80, %c0_81] : memref<4x4x512xf32, #tpu.memory_space<vmem>>, vector<4x4x512xf32>
      %101 = arith.addf %99, %100 : vector<4x4x512xf32>
      %c0_82 = arith.constant 0 : index
      %c0_83 = arith.constant 0 : index
      %c0_84 = arith.constant 0 : index
      %102 = vector.load %arg9[%c0_82, %c0_83, %c0_84] : memref<4x4x512xf32, #tpu.memory_space<vmem>>, vector<4x4x512xf32>
      tpu.vector_store %arg9[%c0_82, %c0_83, %c0_84], %101 {strides = array<i32>} : memref<4x4x512xf32, #tpu.memory_space<vmem>>, vector<4x4x512xf32>,
      %103 = arith.subf %100, %99 : vector<4x4x512xf32>
      %c0_85 = arith.constant 0 : index
      %c0_86 = arith.constant 0 : index
      %c0_87 = arith.constant 0 : index
      %104 = vector.load %arg10[%c0_85, %c0_86, %c0_87] : memref<4x4x512xf32, #tpu.memory_space<vmem>>, vector<4x4x512xf32>
      tpu.vector_store %arg10[%c0_85, %c0_86, %c0_87], %103 {strides = array<i32>} : memref<4x4x512xf32, #tpu.memory_space<vmem>>, vector<4x4x512xf32>,
    } else {
    }
    %cst = arith.constant 0.000000e+00 : f32
    %3 = vector.broadcast %cst : f32 to vector<4x512xf32>
    %cst_1 = arith.constant 0.000000e+00 : f32
    %4 = vector.broadcast %cst_1 : f32 to vector<4x512xf32>
    %c0 = arith.constant 0 : index
    %c0_2 = arith.constant 0 : index
    %c0_3 = arith.constant 0 : index
    %5 = vector.load %arg2[%c0, %c0_2, %c0_3] : memref<1x4x512xf32, #tpu.memory_space<vmem>>, vector<1x1x512xf32>
    %6 = vector.shape_cast %5 : vector<1x1x512xf32> to vector<1x512xf32>
    %c0_4 = arith.constant 0 : index
    %c0_5 = arith.constant 0 : index
    %c0_6 = arith.constant 0 : index
    %7 = vector.load %arg3[%c0_4, %c0_5, %c0_6] : memref<1x4x512xf32, #tpu.memory_space<vmem>>, vector<1x1x512xf32>
    %8 = vector.shape_cast %7 : vector<1x1x512xf32> to vector<1x512xf32>
    %c0_7 = arith.constant 0 : index
    %c0_8 = arith.constant 0 : index
    %c0_9 = arith.constant 0 : index
    %9 = vector.load %arg4[%c0_7, %c0_8, %c0_9] : memref<1x4x512xf32, #tpu.memory_space<vmem>>, vector<1x1x512xf32>
    %10 = vector.shape_cast %9 : vector<1x1x512xf32> to vector<1x512xf32>
    %c0_10 = arith.constant 0 : index
    %c0_11 = arith.constant 0 : index
    %c0_12 = arith.constant 0 : index
    %11 = vector.load %arg5[%c0_10, %c0_11, %c0_12] : memref<4x4x512xf32, #tpu.memory_space<vmem>>, vector<1x4x512xf32>
    %12 = vector.shape_cast %11 : vector<1x4x512xf32> to vector<4x512xf32>
    %c0_13 = arith.constant 0 : index
    %c0_14 = arith.constant 0 : index
    %c0_15 = arith.constant 0 : index
    %13 = vector.load %arg9[%c0_13, %c0_14, %c0_15] : memref<4x4x512xf32, #tpu.memory_space<vmem>>, vector<1x4x512xf32>
    %14 = vector.shape_cast %13 : vector<1x4x512xf32> to vector<4x512xf32>
    %c0_16 = arith.constant 0 : index
    %c0_17 = arith.constant 0 : index
    %c0_18 = arith.constant 0 : index
    %15 = vector.load %arg10[%c0_16, %c0_17, %c0_18] : memref<4x4x512xf32, #tpu.memory_space<vmem>>, vector<1x4x512xf32>
    %16 = vector.shape_cast %15 : vector<1x4x512xf32> to vector<4x512xf32>
    %17 = vector.broadcast %10 : vector<1x512xf32> to vector<4x512xf32>
    %18 = arith.mulf %12, %17 : vector<4x512xf32>
    %19 = vector.broadcast %8 : vector<1x512xf32> to vector<4x512xf32>
    %20 = arith.mulf %19, %14 : vector<4x512xf32>
    %21 = arith.subf %18, %20 : vector<4x512xf32>
    %22 = arith.addf %3, %21 : vector<4x512xf32>
    %23 = vector.broadcast %6 : vector<1x512xf32> to vector<4x512xf32>
    %24 = arith.mulf %23, %16 : vector<4x512xf32>
    %25 = arith.addf %18, %24 : vector<4x512xf32>
    %26 = arith.addf %4, %25 : vector<4x512xf32>
    %c0_19 = arith.constant 0 : index
    %c1 = arith.constant 1 : index
    %c0_20 = arith.constant 0 : index
    %27 = vector.load %arg2[%c0_19, %c1, %c0_20] : memref<1x4x512xf32, #tpu.memory_space<vmem>>, vector<1x1x512xf32>
    %28 = vector.shape_cast %27 : vector<1x1x512xf32> to vector<1x512xf32>
    %c0_21 = arith.constant 0 : index
    %c1_22 = arith.constant 1 : index
    %c0_23 = arith.constant 0 : index
    %29 = vector.load %arg3[%c0_21, %c1_22, %c0_23] : memref<1x4x512xf32, #tpu.memory_space<vmem>>, vector<1x1x512xf32>
    %30 = vector.shape_cast %29 : vector<1x1x512xf32> to vector<1x512xf32>
    %c0_24 = arith.constant 0 : index
    %c1_25 = arith.constant 1 : index
    %c0_26 = arith.constant 0 : index
    %31 = vector.load %arg4[%c0_24, %c1_25, %c0_26] : memref<1x4x512xf32, #tpu.memory_space<vmem>>, vector<1x1x512xf32>
    %32 = vector.shape_cast %31 : vector<1x1x512xf32> to vector<1x512xf32>
    %c1_27 = arith.constant 1 : index
    %c0_28 = arith.constant 0 : index
    %c0_29 = arith.constant 0 : index
    %33 = vector.load %arg5[%c1_27, %c0_28, %c0_29] : memref<4x4x512xf32, #tpu.memory_space<vmem>>, vector<1x4x512xf32>
    %34 = vector.shape_cast %33 : vector<1x4x512xf32> to vector<4x512xf32>
    %c1_30 = arith.constant 1 : index
    %c0_31 = arith.constant 0 : index
    %c0_32 = arith.constant 0 : index
    %35 = vector.load %arg9[%c1_30, %c0_31, %c0_32] : memref<4x4x512xf32, #tpu.memory_space<vmem>>, vector<1x4x512xf32>
    %36 = vector.shape_cast %35 : vector<1x4x512xf32> to vector<4x512xf32>
    %c1_33 = arith.constant 1 : index
    %c0_34 = arith.constant 0 : index
    %c0_35 = arith.constant 0 : index
    %37 = vector.load %arg10[%c1_33, %c0_34, %c0_35] : memref<4x4x512xf32, #tpu.memory_space<vmem>>, vector<1x4x512xf32>
    %38 = vector.shape_cast %37 : vector<1x4x512xf32> to vector<4x512xf32>
    %39 = vector.broadcast %32 : vector<1x512xf32> to vector<4x512xf32>
    %40 = arith.mulf %34, %39 : vector<4x512xf32>
    %41 = vector.broadcast %30 : vector<1x512xf32> to vector<4x512xf32>
    %42 = arith.mulf %41, %36 : vector<4x512xf32>
    %43 = arith.subf %40, %42 : vector<4x512xf32>
    %44 = arith.addf %22, %43 : vector<4x512xf32>
    %45 = vector.broadcast %28 : vector<1x512xf32> to vector<4x512xf32>
    %46 = arith.mulf %45, %38 : vector<4x512xf32>
    %47 = arith.addf %40, %46 : vector<4x512xf32>
    %48 = arith.addf %26, %47 : vector<4x512xf32>
    %c0_36 = arith.constant 0 : index
    %c2 = arith.constant 2 : index
    %c0_37 = arith.constant 0 : index
    %49 = vector.load %arg2[%c0_36, %c2, %c0_37] : memref<1x4x512xf32, #tpu.memory_space<vmem>>, vector<1x1x512xf32>
    %50 = vector.shape_cast %49 : vector<1x1x512xf32> to vector<1x512xf32>
    %c0_38 = arith.constant 0 : index
    %c2_39 = arith.constant 2 : index
    %c0_40 = arith.constant 0 : index
    %51 = vector.load %arg3[%c0_38, %c2_39, %c0_40] : memref<1x4x512xf32, #tpu.memory_space<vmem>>, vector<1x1x512xf32>
    %52 = vector.shape_cast %51 : vector<1x1x512xf32> to vector<1x512xf32>
    %c0_41 = arith.constant 0 : index
    %c2_42 = arith.constant 2 : index
    %c0_43 = arith.constant 0 : index
    %53 = vector.load %arg4[%c0_41, %c2_42, %c0_43] : memref<1x4x512xf32, #tpu.memory_space<vmem>>, vector<1x1x512xf32>
    %54 = vector.shape_cast %53 : vector<1x1x512xf32> to vector<1x512xf32>
    %c2_44 = arith.constant 2 : index
    %c0_45 = arith.constant 0 : index
    %c0_46 = arith.constant 0 : index
    %55 = vector.load %arg5[%c2_44, %c0_45, %c0_46] : memref<4x4x512xf32, #tpu.memory_space<vmem>>, vector<1x4x512xf32>
    %56 = vector.shape_cast %55 : vector<1x4x512xf32> to vector<4x512xf32>
    %c2_47 = arith.constant 2 : index
    %c0_48 = arith.constant 0 : index
    %c0_49 = arith.constant 0 : index
    %57 = vector.load %arg9[%c2_47, %c0_48, %c0_49] : memref<4x4x512xf32, #tpu.memory_space<vmem>>, vector<1x4x512xf32>
    %58 = vector.shape_cast %57 : vector<1x4x512xf32> to vector<4x512xf32>
    %c2_50 = arith.constant 2 : index
    %c0_51 = arith.constant 0 : index
    %c0_52 = arith.constant 0 : index
    %59 = vector.load %arg10[%c2_50, %c0_51, %c0_52] : memref<4x4x512xf32, #tpu.memory_space<vmem>>, vector<1x4x512xf32>
    %60 = vector.shape_cast %59 : vector<1x4x512xf32> to vector<4x512xf32>
    %61 = vector.broadcast %54 : vector<1x512xf32> to vector<4x512xf32>
    %62 = arith.mulf %56, %61 : vector<4x512xf32>
    %63 = vector.broadcast %52 : vector<1x512xf32> to vector<4x512xf32>
    %64 = arith.mulf %63, %58 : vector<4x512xf32>
    %65 = arith.subf %62, %64 : vector<4x512xf32>
    %66 = arith.addf %44, %65 : vector<4x512xf32>
    %67 = vector.broadcast %50 : vector<1x512xf32> to vector<4x512xf32>
    %68 = arith.mulf %67, %60 : vector<4x512xf32>
    %69 = arith.addf %62, %68 : vector<4x512xf32>
    %70 = arith.addf %48, %69 : vector<4x512xf32>
    %c0_53 = arith.constant 0 : index
    %c3 = arith.constant 3 : index
    %c0_54 = arith.constant 0 : index
    %71 = vector.load %arg2[%c0_53, %c3, %c0_54] : memref<1x4x512xf32, #tpu.memory_space<vmem>>, vector<1x1x512xf32>
    %72 = vector.shape_cast %71 : vector<1x1x512xf32> to vector<1x512xf32>
    %c0_55 = arith.constant 0 : index
    %c3_56 = arith.constant 3 : index
    %c0_57 = arith.constant 0 : index
    %73 = vector.load %arg3[%c0_55, %c3_56, %c0_57] : memref<1x4x512xf32, #tpu.memory_space<vmem>>, vector<1x1x512xf32>
    %74 = vector.shape_cast %73 : vector<1x1x512xf32> to vector<1x512xf32>
    %c0_58 = arith.constant 0 : index
    %c3_59 = arith.constant 3 : index
    %c0_60 = arith.constant 0 : index
    %75 = vector.load %arg4[%c0_58, %c3_59, %c0_60] : memref<1x4x512xf32, #tpu.memory_space<vmem>>, vector<1x1x512xf32>
    %76 = vector.shape_cast %75 : vector<1x1x512xf32> to vector<1x512xf32>
    %c3_61 = arith.constant 3 : index
    %c0_62 = arith.constant 0 : index
    %c0_63 = arith.constant 0 : index
    %77 = vector.load %arg5[%c3_61, %c0_62, %c0_63] : memref<4x4x512xf32, #tpu.memory_space<vmem>>, vector<1x4x512xf32>
    %78 = vector.shape_cast %77 : vector<1x4x512xf32> to vector<4x512xf32>
    %c3_64 = arith.constant 3 : index
    %c0_65 = arith.constant 0 : index
    %c0_66 = arith.constant 0 : index
    %79 = vector.load %arg9[%c3_64, %c0_65, %c0_66] : memref<4x4x512xf32, #tpu.memory_space<vmem>>, vector<1x4x512xf32>
    %80 = vector.shape_cast %79 : vector<1x4x512xf32> to vector<4x512xf32>
    %c3_67 = arith.constant 3 : index
    %c0_68 = arith.constant 0 : index
    %c0_69 = arith.constant 0 : index
    %81 = vector.load %arg10[%c3_67, %c0_68, %c0_69] : memref<4x4x512xf32, #tpu.memory_space<vmem>>, vector<1x4x512xf32>
    %82 = vector.shape_cast %81 : vector<1x4x512xf32> to vector<4x512xf32>
    %83 = vector.broadcast %76 : vector<1x512xf32> to vector<4x512xf32>
    %84 = arith.mulf %78, %83 : vector<4x512xf32>
    %85 = vector.broadcast %74 : vector<1x512xf32> to vector<4x512xf32>
    %86 = arith.mulf %85, %80 : vector<4x512xf32>
    %87 = arith.subf %84, %86 : vector<4x512xf32>
    %88 = arith.addf %66, %87 : vector<4x512xf32>
    %89 = vector.broadcast %72 : vector<1x512xf32> to vector<4x512xf32>
    %90 = arith.mulf %89, %82 : vector<4x512xf32>
    %91 = arith.addf %84, %90 : vector<4x512xf32>
    %92 = arith.addf %70, %91 : vector<4x512xf32>
    %c0_70 = arith.constant 0 : index
    %c0_71 = arith.constant 0 : index
    %c0_72 = arith.constant 0 : index
    %93 = vector.load %arg7[%c0_70, %c0_71, %c0_72] : memref<1x4x512xf32, #tpu.memory_space<vmem>>, vector<1x4x512xf32>
    %94 = vector.shape_cast %93 : vector<1x4x512xf32> to vector<4x512xf32>
    %95 = vector.shape_cast %88 : vector<4x512xf32> to vector<1x4x512xf32>
    tpu.vector_store %arg7[%c0_70, %c0_71, %c0_72], %95 {strides = array<i32>} : memref<1x4x512xf32, #tpu.memory_space<vmem>>, vector<1x4x512xf32>,
    %c0_73 = arith.constant 0 : index
    %c0_74 = arith.constant 0 : index
    %c0_75 = arith.constant 0 : index
    %96 = vector.load %arg8[%c0_73, %c0_74, %c0_75] : memref<1x4x512xf32, #tpu.memory_space<vmem>>, vector<1x4x512xf32>
    %97 = vector.shape_cast %96 : vector<1x4x512xf32> to vector<4x512xf32>
    %98 = vector.shape_cast %92 : vector<4x512xf32> to vector<1x4x512xf32>
    tpu.vector_store %arg8[%c0_73, %c0_74, %c0_75], %98 {strides = array<i32>} : memref<1x4x512xf32, #tpu.memory_space<vmem>>, vector<1x4x512xf32>,
    return
  }
  func.func @transform_0(%arg0: i32, %arg1: i32) -> (i32, i32, i32) {
    %c0_i32 = arith.constant 0 : i32
    %c0_i32_0 = arith.constant 0 : i32
    return %arg1, %c0_i32, %arg0 : i32, i32, i32
  }
  func.func @transform_1(%arg0: i32, %arg1: i32) -> (i32, i32, i32) {
    %c0_i32 = arith.constant 0 : i32
    %c0_i32_0 = arith.constant 0 : i32
    return %arg1, %c0_i32, %arg0 : i32, i32, i32
  }
  func.func @transform_2(%arg0: i32, %arg1: i32) -> (i32, i32, i32) {
    %c0_i32 = arith.constant 0 : i32
    %c0_i32_0 = arith.constant 0 : i32
    return %arg1, %c0_i32, %arg0 : i32, i32, i32
  }
  func.func @transform_3(%arg0: i32, %arg1: i32) -> (i32, i32, i32) {
    %c0_i32 = arith.constant 0 : i32
    %c0_i32_0 = arith.constant 0 : i32
    %c0_i32_1 = arith.constant 0 : i32
    return %c0_i32, %c0_i32_0, %arg0 : i32, i32, i32
  }
  func.func @transform_4(%arg0: i32, %arg1: i32) -> (i32, i32, i32) {
    %c0_i32 = arith.constant 0 : i32
    %c0_i32_0 = arith.constant 0 : i32
    %c0_i32_1 = arith.constant 0 : i32
    return %c0_i32, %c0_i32_0, %arg0 : i32, i32, i32
  }
  func.func @transform_5(%arg0: i32, %arg1: i32) -> (i32, i32, i32) {
    %c0_i32 = arith.constant 0 : i32
    %c0_i32_0 = arith.constant 0 : i32
    return %arg1, %c0_i32, %arg0 : i32, i32, i32
  }
  func.func @transform_6(%arg0: i32, %arg1: i32) -> (i32, i32, i32) {
    %c0_i32 = arith.constant 0 : i32
    %c0_i32_0 = arith.constant 0 : i32
    return %arg1, %c0_i32, %arg0 : i32, i32, i32
  }
}

</mosaic_0001>

<bundles_post_ra>
// kernel: tpu_custom_call.1
= control target key start
LH: loop header
LB: loop body
LE: loop exit
PB: predicated region body
PF: predicated region fallthrough
CT: control target
= control target key end

     0   :  { %6 = vsyncpa [#allocation3], 0  ;;  %s114_s0 = inlined_call_operand.hbm [shape: f32[8,128], index: 0, kind: input, shape index: {}]   ;;  %s115_s1 = inlined_call_operand.hbm [shape: f32[8,128], index: 1, kind: output, shape index: {}]  }
   0x1   :  { %7 = vsyncpa [#allocation4], 0  ;;  %s13_s8 = sshll.u32 %s114_s0, 4  ;;  %s96_s9 = smov [#allocation2]   ;;  %s14_s8 = int_to_ptr.hbm [resolvable:$true] %s13_s8 }
   0x2   :  { %s15_s10 = sshll.u32 %s96_s9, 4  ;;  %s16_s10 = int_to_ptr.vmem [resolvable:$true] %s15_s10 }
   0x3   :  { %18 = dma.hbm_to_vmem [thread:$0]  %s14_s8, 128, %s16_s10, [#allocation3]  }
   0x4   :  { %92 = dma.done.wait [#allocation3], 128  }
   0x5   :  { %93 = vsyncadd [#allocation3], 4294967168  ;;  %s97_s11 = smov [#allocation5]   ;;  %s32_s15 = sshll.u32 %s115_s1, 4  ;;  %v23_v0 = vld [vmem:[#allocation2] ss:$0 sm:$0xff]  ;;  %s33_s15 = int_to_ptr.hbm [resolvable:$true] %s32_s15 }
   0x6   :  { %s30_s12 = sshll.u32 %s97_s11, 4  ;;  %24 = vst [vmem:[#allocation5] sm:$0xff] %v23_v0  ;;  %s31_s12 = int_to_ptr.vmem [resolvable:$true] %s30_s12 }
   0x7   :  { %35 = dma.vmem_to_hbm [thread:$0]  %s31_s12, 128, %s33_s15, [#allocation4]  }
   0x8   :  { %94 = dma.done.wait [#allocation4], 128  }
   0x9   :  { %95 = vsyncadd [#allocation4], 4294967168 }
   0xa   :  { %40 = vsyncpa [#allocation3], 1 }
   0xb   :  { %41 = vsyncpa [#allocation4], 1 }

// kernel: spectral_conv3d.2
= control target key start
LH: loop header
LB: loop body
LE: loop exit
PB: predicated region body
PF: predicated region fallthrough
CT: control target
= control target key end

     0   :  { %s1512_s18 = smov 0   ;;  %s1514_s19 = smov 0   ;;  %s1829_s0 = inlined_call_operand.vmem [shape: f32[2,4,2048], index: 0, kind: input, shape index: {}]   ;;  %s1830_s1 = inlined_call_operand.vmem [shape: f32[2,4,2048], index: 1, kind: input, shape index: {}]   ;;  %s1831_s2 = inlined_call_operand.vmem [shape: f32[4,4,2048], index: 2, kind: input, shape index: {}]   ;;  %s1832_s3 = inlined_call_operand.vmem [shape: f32[4,4,2048], index: 3, kind: input, shape index: {}]   ;;  %s1833_s4 = inlined_call_operand.vmem [shape: f32[2,4,2048], index: 4, kind: output, shape index: {0}]   ;;  %s1834_s5 = inlined_call_operand.vmem [shape: f32[2,4,2048], index: 5, kind: output, shape index: {1}]  }
   0x1   :  { %s1516_s20 = smov 0   ;;  %s1518_s21 = smov 0  }
   0x2   :  { %s1520_s22 = smov 0   ;;  %s1522_s23 = smov 0  }
   0x3   :  { %s1524_s24 = smov 0  }
   0x4 LB: > { %s25_s25 = sadd.s32 1, %s1472_s22  ;;  %s28_s26 = sadd.s32 1, %s1476_s23  ;;  %s1480_s24 = sphi %s1524_s24, %s16_s24   ;;  %s1476_s23 = sphi %s1522_s23, %s1841_s23   ;;  %s1472_s22 = sphi %s1520_s22, %s1840_s22   ;;  %s1468_s21 = sphi %s1518_s21, %s1839_s21   ;;  %s1464_s20 = sphi %s1516_s20, %s1838_s20   ;;  %s1460_s19 = sphi %s1514_s19, %s1837_s19   ;;  %s1456_s18 = sphi %s1512_s18, %s1836_s18  }
   0x5   : > { %p26_p0 = scmp.ge.s32.totalorder %s25_s25, 2  ;;  %p154_p1 = scmp.ne.s32.totalorder %s1460_s19, %s1456_s18 }
   0x6   : > { %p155_p2 = scmp.eq.s32.totalorder %s1480_s24, 0  ;;  %s147_s29 = sadd.s32 1, %s1460_s19 }
   0x7   : > { %s1843_s25 = smov (%p26_p0, %s25_s25), 0  ;;  %s1845_s26 = smov (!%p26_p0, %s28_s26), %s1476_s23 }
   0x8   : > { %p1555_p3 = por %p155_p2, %p154_p1  ;;  %p30_p4 = scmp.ge.s32.totalorder %s1845_s26, 4 }
   0x9   : > { %p1319_p6 = scmp.ge.s32.totalorder %s1480_s24, 8 }
   0xa   : > { %s1847_s26 = smov (%p30_p4, %s1845_s26), 0 }
   0xb   : > { %s144_s28 = ssub.s32 %s1476_s23, %s1847_s26  ;;  %262 = sbr.rel (%p1319_p6) target bundleno = 40 (0x28), region = 16 }
   0xc   : > { %p145_p5 = scmp.eq.s32.totalorder %s144_s28, 0 }
   0xe   : > { %s1565_s30 = scalar_select %p145_p5, %s1460_s19, %s147_s29  }
  0x10   : > { %317 = sbr.rel (!%p1555_p3) target bundleno = 28 (0x1c), region = 36  ;;  %s319_s6 = sand.u32 (%p1555_p3), 1, %s1460_s19  }
  0x11   : > { %s1368_s7 = sshll.u32 (%p1555_p3), %s1476_s23, 4  ;;  %s1320_s8 = sshll.u32 (%p1555_p3), %s319_s6, 6 }
  0x12   : > { %s324_s11 = scalar_lea.vmem (%p1555_p3), %s1831_s2, %s1368_s7  ;;  %s321_s12 = scalar_lea.vmem (%p1555_p3), [#allocation4], %s1320_s8 }
  0x13   : > { %v337_v0 = vld [vmem:[%s324_s11] sm:$0xff] (%p1555_p3)  ;;  %v339_v1 = vld [vmem:[%s324_s11 + $0x8] sm:$0xff] (%p1555_p3) }
  0x14   : > { %v341_v2 = vld [vmem:[%s324_s11 + $0x40] sm:$0xff] (%p1555_p3)  ;;  %338 = vst [vmem:[%s321_s12] sm:$0xff] (%p1555_p3), %v337_v0  ;;  %v343_v3 = vld [vmem:[%s324_s11 + $0x48] sm:$0xff] (%p1555_p3) }
  0x15   : > { %340 = vst [vmem:[%s321_s12 + $0x8] sm:$0xff] %v339_v1  ;;  %v345_v4 = vld [vmem:[%s324_s11 + $0x80] sm:$0xff]  ;;  %v347_v5 = vld [vmem:[%s324_s11 + $0x88] sm:$0xff] }
  0x16   : > { %342 = vst [vmem:[%s321_s12 + $0x10] sm:$0xff] %v341_v2  ;;  %v349_v6 = vld [vmem:[%s324_s11 + $0xc0] sm:$0xff]  ;;  %v351_v7 = vld [vmem:[%s324_s11 + $0xc8] sm:$0xff] }
  0x17   : > { %344 = vst [vmem:[%s321_s12 + $0x18] sm:$0xff] %v343_v3 }
  0x18   : > { %346 = vst [vmem:[%s321_s12 + $0x20] sm:$0xff] %v345_v4 }
  0x19   : > { %348 = vst [vmem:[%s321_s12 + $0x28] sm:$0xff] %v347_v5 }
  0x1a   : > { %350 = vst [vmem:[%s321_s12 + $0x30] sm:$0xff] %v349_v6 }
  0x1b   : > { %352 = vst [vmem:[%s321_s12 + $0x38] sm:$0xff] %v351_v7 }
  0x1c PF: > { %358 = sbr.rel (!%p1555_p3) target bundleno = 40 (0x28), region = 59  ;;  %s360_s13 = sand.u32 (%p1555_p3), 1, %s1460_s19  }
  0x1d   : > { %s1369_s14 = sshll.u32 (%p1555_p3), %s1476_s23, 4  ;;  %s1323_s15 = sshll.u32 (%p1555_p3), %s360_s13, 6 }
  0x1e   : > { %s365_s28 = scalar_lea.vmem (%p1555_p3), %s1832_s3, %s1369_s14  ;;  %s362_s29 = scalar_lea.vmem (%p1555_p3), [#allocation5], %s1323_s15 }
  0x1f   : > { %v378_v8 = vld [vmem:[%s365_s28] sm:$0xff] (%p1555_p3)  ;;  %v380_v9 = vld [vmem:[%s365_s28 + $0x8] sm:$0xff] (%p1555_p3) }
  0x20   : > { %v382_v10 = vld [vmem:[%s365_s28 + $0x40] sm:$0xff] (%p1555_p3)  ;;  %379 = vst [vmem:[%s362_s29] sm:$0xff] (%p1555_p3), %v378_v8  ;;  %v384_v11 = vld [vmem:[%s365_s28 + $0x48] sm:$0xff] (%p1555_p3) }
  0x21   : > { %381 = vst [vmem:[%s362_s29 + $0x8] sm:$0xff] %v380_v9  ;;  %v386_v12 = vld [vmem:[%s365_s28 + $0x80] sm:$0xff]  ;;  %v388_v13 = vld [vmem:[%s365_s28 + $0x88] sm:$0xff] }
  0x22   : > { %383 = vst [vmem:[%s362_s29 + $0x10] sm:$0xff] %v382_v10  ;;  %v390_v14 = vld [vmem:[%s365_s28 + $0xc0] sm:$0xff]  ;;  %v392_v15 = vld [vmem:[%s365_s28 + $0xc8] sm:$0xff] }
  0x23   : > { %385 = vst [vmem:[%s362_s29 + $0x18] sm:$0xff] %v384_v11 }
  0x24   : > { %387 = vst [vmem:[%s362_s29 + $0x20] sm:$0xff] %v386_v12 }
  0x25   : > { %389 = vst [vmem:[%s362_s29 + $0x28] sm:$0xff] %v388_v13 }
  0x26   : > { %391 = vst [vmem:[%s362_s29 + $0x30] sm:$0xff] %v390_v14 }
  0x27   : > { %393 = vst [vmem:[%s362_s29 + $0x38] sm:$0xff] %v392_v15 }
  0x28 PF: > { %p1326_p7 = scmp.ge.s32.totalorder %s1480_s24, 1  ;;  %p398_p8 = scmp.lt.s32.totalorder %s1480_s24, 9 }
  0x2a   : > { %p399_p9 = pnand %p1326_p7, %p398_p8 }
  0x2c   : > { %402 = sbr.rel (%p399_p9) target bundleno = 170 (0xaa), region = 82 }
  0x31   : > { %s405_s27 = sand.u32 1, %s1456_s18   ;;  %s1329_s6 = sshll.u32 %s1468_s21, 2 }
  0x32   : > { %s1327_s7 = sshll.u32 %s405_s27, 6  ;;  %p497_p10 = scmp.lt.s32.totalorder %s1464_s20, 1 }
  0x33   : > { %p499_p11 = scmp.lt.s32.totalorder %s1329_s6, 15  ;;  %p1353_p12 = scmp.ne.s32.totalorder %s1464_s20, 0 }
  0x34   : > { %s498_s8 = scalar_select %p497_p10, %s1464_s20, 1 }
  0x35   : > { %s1849_s6 = smov (!%p499_p11, %s1329_s6), 15 }
  0x36   : > { %s1330_s9 = sshll.u32 %s498_s8, 4  ;;  %s1616_s8 = scalar_lea.vmem [#allocation4], %s1327_s7 }
  0x37   : > { %s502_s10 = sadd.s32 %s1330_s9, %s1849_s6  ;;  %s414_s9 = scalar_lea.vmem [#allocation5], %s1327_s7 }
  0x38   : > { %s1331_s11 = sshll.u32 %s502_s10, 2 }
  0x39   : > { %s1591_s14 = scalar_lea.vmem %s1829_s0, %s1331_s11  ;;  %s1596_s18 = scalar_lea.vmem %s1830_s1, %s1331_s11 }
  0x3a   : > { %s1601_s28 = scalar_lea.vmem %s1833_s4, %s1331_s11  ;;  %s1606_s6 = scalar_lea.vmem %s1834_s5, %s1331_s11  ;;  %v558_v16 = vld [vmem:[%s1591_s14] sm:$0xf]  ;;  %v1347_v18 = vld [vmem:[%s1591_s14 + $0x4] sm:$0xf]  ;;  %v1349_v21 = vld [vmem:[%s1591_s14 + $0x8] sm:$0xf] }
  0x3b   : > { %v559_v17 = vld [vmem:[%s1596_s18] sm:$0xf]  ;;  %v1348_v20 = vld [vmem:[%s1596_s18 + $0x4] sm:$0xf]  ;;  %v1350_v22 = vld [vmem:[%s1596_s18 + $0x8] sm:$0xf] }
  0x3c   : > { %v562_v19 = vadd.f32 %v559_v17, %v558_v16  ;;  %v573_v23 = vadd.f32 %v1348_v20, %v1347_v18  ;;  %v585_v24 = vadd.f32 %v1350_v22, %v1349_v21  ;;  %v1351_v25 = vld [vmem:[%s1591_s14 + $0xc] sm:$0xf] }
  0x3d   : > { %v1352_v26 = vld [vmem:[%s1596_s18 + $0xc] sm:$0xf]  ;;  %606 = sbr.rel (%p1353_p12) target bundleno = 87 (0x57), region = 94 }
  0x3e   : > { %566 = vst [vmem:[#allocation6] sm:$0xf] %v562_v19  ;;  %v597_v27 = vadd.f32 %v1352_v26, %v1351_v25 }
  0x3f   : > { %578 = vst [vmem:[#allocation6 + $0x4] sm:$0xf] %v573_v23 }
  0x40   : > { %590 = vst [vmem:[#allocation6 + $0x8] sm:$0xf] %v585_v24 }
  0x41   : > { %602 = vst [vmem:[#allocation6 + $0xc] sm:$0xf] %v597_v27 }
  0x42   : > { %v607_v28 = vld [vmem:[%s1616_s8] sm:$0xff]  ;;  %v608_v29 = vld [vmem:[%s1616_s8 + $0x8] sm:$0xff]  ;;  %v609_v30 = vld [vmem:[%s1616_s8 + $0x10] sm:$0xff] }
  0x43   : > { %v610_v31 = vld [vmem:[%s1616_s8 + $0x18] sm:$0xff]  ;;  %v611_v32 = vld [vmem:[%s1616_s8 + $0x20] sm:$0xff]  ;;  %v612_v33 = vld [vmem:[%s1616_s8 + $0x28] sm:$0xff] }
  0x44   : > { %v613_v34 = vld [vmem:[%s1616_s8 + $0x30] sm:$0xff]  ;;  %v615_v35 = vld [vmem:[%s414_s9] sm:$0xff]  ;;  %v616_v36 = vld [vmem:[%s414_s9 + $0x8] sm:$0xff] }
  0x45   : > { %v617_v37 = vld [vmem:[%s414_s9 + $0x10] sm:$0xff]  ;;  %v618_v38 = vld [vmem:[%s414_s9 + $0x18] sm:$0xff]  ;;  %v623_v39 = vadd.f32 %v615_v35, %v607_v28  ;;  %v619_v40 = vld [vmem:[%s414_s9 + $0x20] sm:$0xff]  ;;  %v624_v43 = vadd.f32 %v616_v36, %v608_v29  ;;  %v639_v52 = vsub.f32 %v615_v35, %v607_v28  ;;  %v640_v53 = vsub.f32 %v616_v36, %v608_v29 }
  0x46   : > { %v620_v41 = vld [vmem:[%s414_s9 + $0x28] sm:$0xff]  ;;  %v621_v42 = vld [vmem:[%s414_s9 + $0x30] sm:$0xff]  ;;  %v625_v44 = vadd.f32 %v617_v37, %v609_v30  ;;  %v626_v45 = vadd.f32 %v618_v38, %v610_v31  ;;  %v614_v46 = vld [vmem:[%s1616_s8 + $0x38] sm:$0xff]  ;;  %v627_v48 = vadd.f32 %v619_v40, %v611_v32  ;;  %v641_v54 = vsub.f32 %v617_v37, %v609_v30 }
  0x47   : > { %v622_v47 = vld [vmem:[%s414_s9 + $0x38] sm:$0xff]  ;;  %631 = vst [vmem:[#allocation2 + $0x30] sm:$0xff] %v623_v39  ;;  %v628_v49 = vadd.f32 %v620_v41, %v612_v33  ;;  %v629_v50 = vadd.f32 %v621_v42, %v613_v34  ;;  %v642_v55 = vsub.f32 %v618_v38, %v610_v31  ;;  %v643_v56 = vsub.f32 %v619_v40, %v611_v32 }
  0x48   : > { %632 = vst [vmem:[#allocation2] sm:$0xff] %v624_v43  ;;  %v630_v51 = vadd.f32 %v622_v47, %v614_v46  ;;  %v644_v57 = vsub.f32 %v620_v41, %v612_v33  ;;  %v645_v58 = vsub.f32 %v621_v42, %v613_v34  ;;  %v646_v59 = vsub.f32 %v622_v47, %v614_v46 }
  0x49   : > { %633 = vst [vmem:[#allocation2 + $0x18] sm:$0xff] %v625_v44 }
  0x4a   : > { %634 = vst [vmem:[#allocation2 + $0x10] sm:$0xff] %v626_v45 }
  0x4b   : > { %635 = vst [vmem:[#allocation2 + $0x8] sm:$0xff] %v627_v48 }
  0x4c   : > { %636 = vst [vmem:[#allocation2 + $0x20] sm:$0xff] %v628_v49 }
  0x4d   : > { %637 = vst [vmem:[#allocation2 + $0x28] sm:$0xff] %v629_v50 }
  0x4e   : > { %638 = vst [vmem:[#allocation2 + $0x38] sm:$0xff] %v630_v51 }
  0x4f   : > { %647 = vst [vmem:[#allocation3] sm:$0xff] %v639_v52 }
  0x50   : > { %648 = vst [vmem:[#allocation3 + $0x18] sm:$0xff] %v640_v53 }
  0x51   : > { %649 = vst [vmem:[#allocation3 + $0x10] sm:$0xff] %v641_v54 }
  0x52   : > { %650 = vst [vmem:[#allocation3 + $0x20] sm:$0xff] %v642_v55 }
  0x53   : > { %651 = vst [vmem:[#allocation3 + $0x28] sm:$0xff] %v643_v56 }
  0x54   : > { %652 = vst [vmem:[#allocation3 + $0x8] sm:$0xff] %v644_v57 }
  0x55   : > { %653 = vst [vmem:[#allocation3 + $0x30] sm:$0xff] %v645_v58 }
  0x56   : > { %654 = vst [vmem:[#allocation3 + $0x38] sm:$0xff] %v646_v59 }
  0x57 PF: > { %v660_v60 = vld [vmem:[#allocation2 + $0x30] sm:$0xff]  ;;  %v661_v61 = vld [vmem:[#allocation2] sm:$0xff]  ;;  %v663_v63 = vld [vmem:[#allocation3 + $0x18] sm:$0xff]  ;;  %vm671_vm0 = vcmask 1043456  }
  0x58   : > { %689 = vst [vmem:[#allocation1] ss:$2 sm:$0xff] %v660_v60  ;;  %v662_v62 = vld [vmem:[#allocation3] sm:$0xff]  ;;  %v768_v4 = vld [vmem:[#allocation2 + $0x18] sm:$0xff]  ;;  %v769_v5 = vld [vmem:[#allocation2 + $0x10] sm:$0xff] }
  0x59   : > { %691 = vst [vmem:[#allocation1 + $0x10] ss:$2 sm:$0xff] %v661_v61  ;;  %v771_v12 = vld [vmem:[#allocation3 + $0x10] sm:$0xff]  ;;  %v772_v13 = vld [vmem:[#allocation3 + $0x20] sm:$0xff]  ;;  %v876_v37 = vld [vmem:[#allocation2 + $0x8] sm:$0xff] }
  0x5a   : > { %v1648_v18 = vld [vmem:[%s1591_s14] ss:$4 sm:$0xf]  ;;  %v1667_v43 = vld [vmem:[%s1591_s14 + $0x1] ss:$4 sm:$0xf] }
  0x5b   : > { %v656_v19 = vld [vmem:[%s1596_s18] ss:$4 sm:$0xf]  ;;  %v719_v29 = vperm.slane %v1648_v18, 0  ;;  %v720_v32 = vperm.slane %v1648_v18, 1  ;;  %v721_v33 = vperm.slane %v1648_v18, 2 }
  0x5c   : > { %v679_v25 = vperm.slane %v656_v19, 0  ;;  %v680_v26 = vperm.slane %v656_v19, 1  ;;  %v681_v27 = vperm.slane %v656_v19, 2  ;;  %v682_v28 = vperm.slane %v656_v19, 3  ;;  %v658_v30 = vld [vmem:[%s1616_s8] sm:$0xff]  ;;  %v659_v61 = vld [vmem:[%s1616_s8 + $0x8] sm:$0xff] }
  0x5d   : > { %v657_v10 = vld [vmem:[#allocation6] ss:$4 sm:$0xf]  ;;  %v1651_v21 = vld [vmem:[#allocation6 + $0x1] ss:$4 sm:$0xf] }
  0x5e   : > { %v666_v11 = vperm.slane %v657_v10, 1  ;;  %v668_v20 = vperm.slane %v657_v10, 3  ;;  %v665_v22 = vperm.slane %v657_v10, 0  ;;  %v667_v23 = vperm.slane %v657_v10, 2  ;;  %v877_v38 = vld [vmem:[#allocation2 + $0x20] sm:$0xff]  ;;  %v879_v19 = vld [vmem:[#allocation3 + $0x28] sm:$0xff] }
  0x5f   : > { %v1627_v0 = vld.sshfl [vmem:[#allocation1] sm:$0xff pattern:$0x75316420]  ;;  %v693_v1 = vld.sshfl [vmem:[#allocation1 + $0x8] sm:$0xff pattern:$0x75316420] }
  0x60   : > { %v1629_v2 = vld.sshfl [vmem:[#allocation1 + $0x10] sm:$0xff pattern:$0x75316420]  ;;  %v695_v3 = vld.sshfl [vmem:[#allocation1 + $0x18] sm:$0xff pattern:$0x75316420]  ;;  %v701_v42 = vmul.f32 %v693_v1, %v680_v26  ;;  %v700_v57 = vmul.f32 %v1627_v0, %v679_v25 }
  0x61   : > { %729 = vst [vmem:[#allocation1] ss:$2 sm:$0xff] %v662_v62  ;;  %v669_v24 = vrot.slane %v666_v11, 4  ;;  %v670_v31 = vrot.slane %v668_v20, 4  ;;  %v775_v34 = vperm.slane %v1651_v21, 1  ;;  %v777_v35 = vperm.slane %v1651_v21, 3 }
  0x62   : > { %731 = vst [vmem:[#allocation1 + $0x10] ss:$2 sm:$0xff] %v663_v63  ;;  %v1659_v36 = vld [vmem:[#allocation6 + $0x2] ss:$4 sm:$0xf]  ;;  %v722_v47 = vperm.slane %v1648_v18, 3  ;;  %v703_v50 = vmul.f32 %v695_v3, %v682_v28 }
  0x63   : > { %v672_v39 = vsel %vm671_vm0, %v665_v22, %v669_v24  ;;  %v673_v46 = vsel %vm671_vm0, %v667_v23, %v670_v31  ;;  %v1676_v48 = vld [vmem:[%s1596_s18 + $0x1] ss:$4 sm:$0xf]  ;;  %v774_v51 = vperm.slane %v1651_v21, 0  ;;  %v778_v52 = vrot.slane %v775_v34, 4  ;;  %v1356_v62 = vld [vmem:[%s1616_s8 + $0x10] sm:$0xff] }
  0x64   : > { %v1678_v49 = vmul.f32 %v672_v39, %v658_v30  ;;  %v776_v53 = vperm.slane %v1651_v21, 2  ;;  %v787_v54 = vperm.slane %v1676_v48, 0  ;;  %v883_v55 = vperm.slane %v1659_v36, 1  ;;  %v1357_v11 = vld [vmem:[%s1616_s8 + $0x18] sm:$0xff]  ;;  %v880_v20 = vld [vmem:[#allocation3 + $0x8] sm:$0xff] }
  0x65   : > { %v885_v56 = vperm.slane %v1659_v36, 3  ;;  %v708_v58 = vrot.slane %v701_v42, 4  ;;  %v779_v59 = vrot.slane %v777_v35, 4  ;;  %v788_v60 = vperm.slane %v1676_v48, 1 }
  0x66   : > { %v789_v63 = vperm.slane %v1676_v48, 2  ;;  %v790_v1 = vperm.slane %v1676_v48, 3  ;;  %v827_v3 = vperm.slane %v1667_v43, 0  ;;  %v709_v10 = vrot.slane %v703_v50, 4 }
  0x67   : > { %v780_v0 = vsel %vm671_vm0, %v774_v51, %v778_v52  ;;  %v882_v21 = vperm.slane %v1659_v36, 0  ;;  %v884_v22 = vperm.slane %v1659_v36, 2  ;;  %v886_v23 = vrot.slane %v883_v55, 4  ;;  %v979_v50 = vld [vmem:[#allocation6 + $0x3] ss:$4 sm:$0xf] }
  0x68   : > { %v1631_v6 = vld.sshfl [vmem:[#allocation1] sm:$0xff pattern:$0x75316420]  ;;  %v1633_v7 = vld.sshfl [vmem:[#allocation1 + $0x8] sm:$0xff pattern:$0x75316420]  ;;  %v1703_v25 = vsel %vm671_vm0, %v700_v57, %v708_v58  ;;  %v1706_v28 = vmul.f32 %v673_v46, %v659_v61  ;;  %v1712_v36 = vmul.f32 %v1356_v62, %v780_v0 }
  0x69   : > { %v1635_v8 = vld.sshfl [vmem:[#allocation1 + $0x10] sm:$0xff pattern:$0x75316420]  ;;  %v1637_v9 = vld.sshfl [vmem:[#allocation1 + $0x18] sm:$0xff pattern:$0x75316420]  ;;  %v741_v30 = vmul.f32 %v1633_v7, %v720_v32  ;;  %v714_v7 = vsub.f32 %v1678_v49, %v1703_v25 }
  0x6a   : > { %797 = vst [vmem:[#allocation1] ss:$2 sm:$0xff] %v768_v4  ;;  %v828_v4 = vperm.slane %v1667_v43, 1  ;;  %v887_v24 = vrot.slane %v885_v56, 4  ;;  %v1710_v31 = vmul.f32 %v1637_v9, %v722_v47  ;;  %v830_v39 = vperm.slane %v1667_v43, 3  ;;  %v984_v0 = vld [vmem:[#allocation2 + $0x28] sm:$0xff] }
  0x6b   : > { %799 = vst [vmem:[#allocation1 + $0x10] ss:$2 sm:$0xff] %v769_v5  ;;  %v702_v5 = vmul.f32 %v1629_v2, %v681_v27  ;;  %v781_v2 = vsel %vm671_vm0, %v776_v53, %v779_v59  ;;  %v1725_v9 = vld [vmem:[%s1591_s14 + $0x2] ss:$4 sm:$0xf]  ;;  %v748_v51 = vrot.slane %v741_v30, 4  ;;  %v888_v53 = vsel %vm671_vm0, %v882_v21, %v886_v23 }
  0x6c   : > { %v1722_v32 = vmul.f32 %v1357_v11, %v781_v2  ;;  %v749_v52 = vrot.slane %v1710_v31, 4  ;;  %v889_v55 = vsel %vm671_vm0, %v884_v22, %v887_v24  ;;  %v1361_v59 = vld [vmem:[%s1616_s8 + $0x28] sm:$0xff]  ;;  %v935_v61 = vperm.slane %v1725_v9, 0  ;;  %v1363_v30 = vld [vmem:[%s1596_s18 + $0x3] ss:$4 sm:$0xf] }
  0x6d   : > { %v1718_v42 = vsel %vm671_vm0, %v702_v5, %v709_v10  ;;  %v936_v62 = vperm.slane %v1725_v9, 1  ;;  %v937_v10 = vperm.slane %v1725_v9, 2  ;;  %v938_v11 = vperm.slane %v1725_v9, 3 }
  0x6e   : > { %v1758_v2 = vmul.f32 %v1361_v59, %v889_v55  ;;  %v990_v31 = vperm.slane %v979_v50, 0  ;;  %v1005_v55 = vperm.slane %v1363_v30, 2  ;;  %v1362_v59 = vld [vmem:[%s1591_s14 + $0x3] ss:$4 sm:$0xf] }
  0x71   : > { %v1639_v14 = vld.sshfl [vmem:[#allocation1] sm:$0xff pattern:$0x75316420]  ;;  %v1641_v15 = vld.sshfl [vmem:[#allocation1 + $0x8] sm:$0xff pattern:$0x75316420] }
  0x72   : > { %v1643_v16 = vld.sshfl [vmem:[#allocation1 + $0x10] sm:$0xff pattern:$0x75316420]  ;;  %v1645_v17 = vld.sshfl [vmem:[#allocation1 + $0x18] sm:$0xff pattern:$0x75316420]  ;;  %v808_v56 = vmul.f32 %v1639_v14, %v787_v54 }
  0x73   : > { %837 = vst [vmem:[#allocation1] ss:$2 sm:$0xff] %v771_v12  ;;  %v829_v12 = vperm.slane %v1667_v43, 2  ;;  %v810_v57 = vmul.f32 %v1643_v16, %v789_v63  ;;  %v985_v14 = vld [vmem:[#allocation2 + $0x38] sm:$0xff]  ;;  %v993_v54 = vperm.slane %v979_v50, 3  ;;  %v715_v16 = vsub.f32 %v1706_v28, %v1718_v42 }
  0x74   : > { %839 = vst [vmem:[#allocation1 + $0x10] ss:$2 sm:$0xff] %v772_v13  ;;  %v1698_v13 = vld [vmem:[%s1596_s18 + $0x2] ss:$4 sm:$0xf]  ;;  %v742_v63 = vmul.f32 %v1635_v8, %v721_v33  ;;  %v992_v42 = vperm.slane %v979_v50, 2 }
  0x75   : > { %v896_v46 = vperm.slane %v1698_v13, 1  ;;  %v897_v47 = vperm.slane %v1698_v13, 2  ;;  %v898_v48 = vperm.slane %v1698_v13, 3 }
  0x7a   : > { %v1662_v40 = vld.sshfl [vmem:[#allocation1] sm:$0xff pattern:$0x75316420]  ;;  %v1664_v41 = vld.sshfl [vmem:[#allocation1 + $0x8] sm:$0xff pattern:$0x75316420] }
  0x7b   : > { %v1669_v44 = vld.sshfl [vmem:[#allocation1 + $0x10] sm:$0xff pattern:$0x75316420]  ;;  %v1671_v45 = vld.sshfl [vmem:[#allocation1 + $0x18] sm:$0xff pattern:$0x75316420]  ;;  %v849_v24 = vmul.f32 %v1664_v41, %v828_v4 }
  0x7c   : > { %905 = vst [vmem:[#allocation1] ss:$2 sm:$0xff] %v876_v37  ;;  %v809_v37 = vmul.f32 %v1641_v15, %v788_v60  ;;  %v740_v15 = vmul.f32 %v1631_v6, %v719_v29  ;;  %v1360_v29 = vld [vmem:[%s1616_s8 + $0x20] sm:$0xff] }
  0x7d   : > { %907 = vst [vmem:[#allocation1 + $0x10] ss:$2 sm:$0xff] %v877_v38  ;;  %v811_v38 = vmul.f32 %v1645_v17, %v790_v1  ;;  %v895_v17 = vperm.slane %v1698_v13, 0  ;;  %v991_v1 = vperm.slane %v979_v50, 1 }
  0x7e   : > { %v816_v58 = vrot.slane %v809_v37, 4  ;;  %v750_v13 = vsel %vm671_vm0, %v740_v15, %v748_v51  ;;  %v751_v15 = vsel %vm671_vm0, %v742_v63, %v749_v52  ;;  %v1364_v51 = vld [vmem:[%s1616_s8 + $0x30] sm:$0xff] }
  0x7f   : > { %v817_v6 = vrot.slane %v811_v38, 4  ;;  %v1763_v41 = vadd.f32 %v750_v13, %v1678_v49 }
  0x80   : > { %v818_v22 = vsel %vm671_vm0, %v808_v56, %v816_v58  ;;  %v1006_v58 = vperm.slane %v1363_v30, 3 }
  0x81   : > { %v819_v23 = vsel %vm671_vm0, %v810_v57, %v817_v6  ;;  %v822_v4 = vsub.f32 %v1712_v36, %v818_v22 }
  0x83   : > { %v908_v26 = vld.sshfl [vmem:[#allocation1] sm:$0xff pattern:$0x75316420]  ;;  %v909_v27 = vld.sshfl [vmem:[#allocation1 + $0x8] sm:$0xff pattern:$0x75316420] }
  0x84   : > { %v910_v34 = vld.sshfl [vmem:[#allocation1 + $0x10] sm:$0xff pattern:$0x75316420]  ;;  %v911_v35 = vld.sshfl [vmem:[#allocation1 + $0x18] sm:$0xff pattern:$0x75316420]  ;;  %v917_v60 = vmul.f32 %v909_v27, %v896_v46  ;;  %v916_v8 = vmul.f32 %v908_v26, %v895_v17  ;;  %v851_v26 = vmul.f32 %v1671_v45, %v830_v39  ;;  %v823_v17 = vsub.f32 %v1722_v32, %v819_v23 }
  0x85   : > { %945 = vst [vmem:[#allocation1] ss:$2 sm:$0xff] %v879_v19  ;;  %v919_v5 = vmul.f32 %v911_v35, %v898_v48  ;;  %v1751_v19 = vmul.f32 %v1360_v29, %v888_v53  ;;  %v994_v35 = vrot.slane %v991_v1, 4  ;;  %v918_v37 = vmul.f32 %v910_v34, %v897_v47  ;;  %v1365_v45 = vld [vmem:[%s1616_s8 + $0x38] sm:$0xff] }
  0x86   : > { %947 = vst [vmem:[#allocation1 + $0x10] ss:$2 sm:$0xff] %v880_v20  ;;  %v924_v33 = vrot.slane %v917_v60, 4  ;;  %v995_v46 = vrot.slane %v993_v54, 4  ;;  %v848_v34 = vmul.f32 %v1662_v40, %v827_v3  ;;  %v856_v47 = vrot.slane %v849_v24, 4  ;;  %v987_v60 = vld [vmem:[#allocation3 + $0x30] sm:$0xff] }
  0x87   : > { %v925_v38 = vrot.slane %v919_v5, 4  ;;  %v1003_v48 = vperm.slane %v1363_v30, 0  ;;  %v996_v52 = vsel %vm671_vm0, %v990_v31, %v994_v35  ;;  %v1004_v53 = vperm.slane %v1363_v30, 1  ;;  %v988_v1 = vld [vmem:[#allocation3 + $0x38] sm:$0xff] }
  0x88   : > { %v926_v50 = vsel %vm671_vm0, %v916_v8, %v924_v33  ;;  %v997_v39 = vsel %vm671_vm0, %v992_v42, %v995_v46  ;;  %v824_v40 = vadd.f32 %v822_v4, %v714_v7  ;;  %v850_v3 = vmul.f32 %v1669_v44, %v829_v12 }
  0x89   : > { %v927_v56 = vsel %vm671_vm0, %v918_v37, %v925_v38  ;;  %v857_v6 = vrot.slane %v851_v26, 4  ;;  %v825_v5 = vadd.f32 %v823_v17, %v715_v16  ;;  %v1001_v25 = vmul.f32 %v1365_v45, %v997_v39 }
  0x8a   : > { %v931_v49 = vsub.f32 %v1758_v2, %v927_v56  ;;  %v755_v30 = vadd.f32 %v751_v15, %v1706_v28  ;;  %v1044_v31 = vperm.slane %v1362_v59, 1  ;;  %v1043_v37 = vperm.slane %v1362_v59, 0 }
  0x8b   : > { %v859_v22 = vsel %vm671_vm0, %v850_v3, %v857_v6  ;;  %v1045_v46 = vperm.slane %v1362_v59, 2  ;;  %v1046_v15 = vperm.slane %v1362_v59, 3 }
  0x8c   : > { %v948_v20 = vld.sshfl [vmem:[#allocation1] sm:$0xff pattern:$0x75316420]  ;;  %v949_v21 = vld.sshfl [vmem:[#allocation1 + $0x8] sm:$0xff pattern:$0x75316420]  ;;  %v863_v38 = vadd.f32 %v859_v22, %v1722_v32 }
  0x8d   : > { %v950_v27 = vld.sshfl [vmem:[#allocation1 + $0x10] sm:$0xff pattern:$0x75316420]  ;;  %v951_v18 = vld.sshfl [vmem:[#allocation1 + $0x18] sm:$0xff pattern:$0x75316420]  ;;  %v957_v57 = vmul.f32 %v949_v21, %v936_v62  ;;  %v858_v62 = vsel %vm671_vm0, %v848_v34, %v856_v47  ;;  %v956_v12 = vmul.f32 %v948_v20, %v935_v61  ;;  %v933_v61 = vadd.f32 %v931_v49, %v825_v5 }
  0x8e   : > { %1013 = vst [vmem:[#allocation1] ss:$2 sm:$0xff] %v984_v0  ;;  %v959_v29 = vmul.f32 %v951_v18, %v938_v11  ;;  %v930_v0 = vsub.f32 %v1751_v19, %v926_v50  ;;  %v958_v23 = vmul.f32 %v950_v27, %v937_v10  ;;  %v862_v35 = vadd.f32 %v858_v62, %v1712_v36 }
  0x8f   : > { %1015 = vst [vmem:[#allocation1 + $0x10] ss:$2 sm:$0xff] %v985_v14  ;;  %v1000_v14 = vmul.f32 %v1364_v51, %v996_v52  ;;  %v964_v11 = vrot.slane %v957_v57, 4  ;;  %v865_v47 = vadd.f32 %v863_v38, %v755_v30 }
  0x90   : > { %v965_v24 = vrot.slane %v959_v29, 4  ;;  %v932_v8 = vadd.f32 %v930_v0, %v824_v40  ;;  %v864_v36 = vadd.f32 %v862_v35, %v1763_v41 }
  0x91   : > { %v966_v42 = vsel %vm671_vm0, %v956_v12, %v964_v11 }
  0x92   : > { %v967_v27 = vsel %vm671_vm0, %v958_v23, %v965_v24  ;;  %v970_v26 = vadd.f32 %v966_v42, %v1751_v19 }
  0x94   : > { %v972_v41 = vadd.f32 %v970_v26, %v864_v36 }
  0x95   : > { %v1016_v54 = vld.sshfl [vmem:[#allocation1] sm:$0xff pattern:$0x75316420]  ;;  %v1017_v63 = vld.sshfl [vmem:[#allocation1 + $0x8] sm:$0xff pattern:$0x75316420] }
  0x96   : > { %v1018_v7 = vld.sshfl [vmem:[#allocation1 + $0x10] sm:$0xff pattern:$0x75316420]  ;;  %v1019_v43 = vld.sshfl [vmem:[#allocation1 + $0x18] sm:$0xff pattern:$0x75316420]  ;;  %v1024_v13 = vmul.f32 %v1016_v54, %v1003_v48  ;;  %v1025_v44 = vmul.f32 %v1017_v63, %v1004_v53  ;;  %v971_v48 = vadd.f32 %v967_v27, %v1758_v2 }
  0x97   : > { %v1026_v21 = vmul.f32 %v1018_v7, %v1005_v55  ;;  %v1027_v16 = vmul.f32 %v1019_v43, %v1006_v58  ;;  %1053 = vst [vmem:[#allocation1] ss:$2 sm:$0xff] %v987_v60 }
  0x98   : > { %v1032_v18 = vrot.slane %v1025_v44, 4  ;;  %1055 = vst [vmem:[#allocation1 + $0x10] ss:$2 sm:$0xff] %v988_v1  ;;  %v973_v19 = vadd.f32 %v971_v48, %v865_v47 }
  0x99   : > { %v1033_v33 = vrot.slane %v1027_v16, 4 }
  0x9a   : > { %v1034_v20 = vsel %vm671_vm0, %v1024_v13, %v1032_v18 }
  0x9b   : > { %v1035_v9 = vsel %vm671_vm0, %v1026_v21, %v1033_v33  ;;  %v1038_v10 = vsub.f32 %v1000_v14, %v1034_v20 }
  0x9c   : > { %v1039_v28 = vsub.f32 %v1001_v25, %v1035_v9 }
  0x9d   : > { %v1040_v4 = vadd.f32 %v1038_v10, %v932_v8 }
  0x9e   : > { %v1041_v17 = vadd.f32 %v1039_v28, %v933_v61  ;;  %v1056_v34 = vld.sshfl [vmem:[#allocation1] sm:$0xff pattern:$0x75316420]  ;;  %v1057_v32 = vld.sshfl [vmem:[#allocation1 + $0x8] sm:$0xff pattern:$0x75316420] }
  0x9f   : > { %v1058_v50 = vld.sshfl [vmem:[#allocation1 + $0x10] sm:$0xff pattern:$0x75316420]  ;;  %v1059_v51 = vld.sshfl [vmem:[#allocation1 + $0x18] sm:$0xff pattern:$0x75316420]  ;;  %v1064_v52 = vmul.f32 %v1056_v34, %v1043_v37  ;;  %v1065_v53 = vmul.f32 %v1057_v32, %v1044_v31  ;;  %1082 = vst [vmem:[%s1601_s28] sm:$0xff] %v1040_v4 }
  0xa0   : > { %v1066_v55 = vmul.f32 %v1058_v50, %v1045_v46  ;;  %v1067_v56 = vmul.f32 %v1059_v51, %v1046_v15  ;;  %1083 = vst [vmem:[%s1601_s28 + $0x8] sm:$0xff] %v1041_v17 }
  0xa1   : > { %v1072_v57 = vrot.slane %v1065_v53, 4 }
  0xa2   : > { %v1073_v45 = vrot.slane %v1067_v56, 4 }
  0xa3   : > { %v1074_v39 = vsel %vm671_vm0, %v1064_v52, %v1072_v57 }
  0xa4   : > { %v1075_v58 = vsel %vm671_vm0, %v1066_v55, %v1073_v45  ;;  %v1078_v40 = vadd.f32 %v1074_v39, %v1000_v14 }
  0xa5   : > { %v1079_v2 = vadd.f32 %v1075_v58, %v1001_v25 }
  0xa6   : > { %v1080_v3 = vadd.f32 %v1078_v40, %v972_v41 }
  0xa7   : > { %v1081_v6 = vadd.f32 %v1079_v2, %v973_v19 }
  0xa8   : > { %1084 = vst [vmem:[%s1606_s6] sm:$0xff] %v1080_v3 }
  0xa9   : > { %1085 = vst [vmem:[%s1606_s6 + $0x8] sm:$0xff] %v1081_v6 }
  0xaa PF: > { %s16_s24 = sadd.s32 1, %s1480_s24   ;;  %s1836_s18 = smov %s1460_s19 }
  0xab   : > { %p13_p13 = scmp.ge.s32.totalorder %s16_s24, 10   ;;  %s1837_s19 = smov %s1565_s30 }
  0xac   : > { %s1838_s20 = smov %s1472_s22  ;;  %s1839_s21 = smov %s1476_s23 }
  0xad   : > { %s1840_s22 = smov %s1843_s25  ;;  %s1841_s23 = smov %s1847_s26 }
  0xae   :  { %15 = sbr.rel (!%p13_p13) target bundleno = 4 (0x4), region = 196 }

// kernel: reverse.1
= control target key start
LH: loop header
LB: loop body
LE: loop exit
PB: predicated region body
PF: predicated region fallthrough
CT: control target
= control target key end

     0   :  { %s1352_s0 = inlined_call_operand.vmem [shape: f32[2,4,16,16,7], index: 0, kind: input, shape index: {}]   ;;  %s1353_s1 = inlined_call_operand.vmem [shape: f32[2,4,16,16,7], index: 1, kind: output, shape index: {}]  }
   0x1   :  { %v448_v0 = vld [vmem:[%s1352_s0 + $0x60] sm:$0xff]  ;;  %v451_v2 = vld [vmem:[%s1352_s0 + $0xd0] sm:$0xff]  ;;  %v558_v56 = vld [vmem:[%s1352_s0 + $0x68] sm:$0xff] }
   0x2   :  { %v449_v1 = vld [vmem:[%s1352_s0 + $0x220] sm:$0xff]  ;;  %4 = vst [vmem:[%s1353_s1] sm:$0xff] %v448_v0  ;;  %v453_v3 = vld [vmem:[%s1352_s0 + $0x290] sm:$0xff]  ;;  %v560_v57 = vld [vmem:[%s1352_s0 + $0x228] sm:$0xff] }
   0x3   :  { %450 = vst [vmem:[%s1353_s1 + $0x1c0] sm:$0xff] %v449_v1  ;;  %v455_v4 = vld [vmem:[%s1352_s0 + $0x140] sm:$0xff]  ;;  %v459_v6 = vld [vmem:[%s1352_s0 + $0x1b0] sm:$0xff]  ;;  %v562_v58 = vld [vmem:[%s1352_s0 + $0xd8] sm:$0xff] }
   0x4   :  { %452 = vst [vmem:[%s1353_s1 + $0x70] sm:$0xff] %v451_v2  ;;  %v457_v5 = vld [vmem:[%s1352_s0 + $0x300] sm:$0xff]  ;;  %v461_v7 = vld [vmem:[%s1352_s0 + $0x370] sm:$0xff]  ;;  %v564_v59 = vld [vmem:[%s1352_s0 + $0x298] sm:$0xff] }
   0x5   :  { %454 = vst [vmem:[%s1353_s1 + $0x230] sm:$0xff] %v453_v3  ;;  %v463_v8 = vld [vmem:[%s1352_s0 + $0x50] sm:$0xff]  ;;  %v467_v10 = vld [vmem:[%s1352_s0 + $0xc0] sm:$0xff]  ;;  %v566_v60 = vld [vmem:[%s1352_s0 + $0x148] sm:$0xff] }
   0x6   :  { %456 = vst [vmem:[%s1353_s1 + $0xe0] sm:$0xff] %v455_v4  ;;  %v465_v9 = vld [vmem:[%s1352_s0 + $0x210] sm:$0xff]  ;;  %v469_v11 = vld [vmem:[%s1352_s0 + $0x280] sm:$0xff]  ;;  %v568_v61 = vld [vmem:[%s1352_s0 + $0x308] sm:$0xff] }
   0x7   :  { %458 = vst [vmem:[%s1353_s1 + $0x2a0] sm:$0xff] %v457_v5  ;;  %v471_v12 = vld [vmem:[%s1352_s0 + $0x130] sm:$0xff]  ;;  %v475_v14 = vld [vmem:[%s1352_s0 + $0x1a0] sm:$0xff]  ;;  %v570_v62 = vld [vmem:[%s1352_s0 + $0x1b8] sm:$0xff] }
   0x8   :  { %460 = vst [vmem:[%s1353_s1 + $0x150] sm:$0xff] %v459_v6  ;;  %v473_v13 = vld [vmem:[%s1352_s0 + $0x2f0] sm:$0xff]  ;;  %v477_v15 = vld [vmem:[%s1352_s0 + $0x360] sm:$0xff]  ;;  %v572_v63 = vld [vmem:[%s1352_s0 + $0x378] sm:$0xff] }
   0x9   :  { %462 = vst [vmem:[%s1353_s1 + $0x310] sm:$0xff] %v461_v7  ;;  %v479_v16 = vld [vmem:[%s1352_s0 + $0x40] sm:$0xff]  ;;  %v483_v18 = vld [vmem:[%s1352_s0 + $0xb0] sm:$0xff]  ;;  %v574_v0 = vld [vmem:[%s1352_s0 + $0x58] sm:$0xff] }
   0xa   :  { %464 = vst [vmem:[%s1353_s1 + $0x10] sm:$0xff] %v463_v8  ;;  %v481_v17 = vld [vmem:[%s1352_s0 + $0x200] sm:$0xff]  ;;  %v485_v19 = vld [vmem:[%s1352_s0 + $0x270] sm:$0xff]  ;;  %v576_v1 = vld [vmem:[%s1352_s0 + $0x218] sm:$0xff] }
   0xb   :  { %466 = vst [vmem:[%s1353_s1 + $0x1d0] sm:$0xff] %v465_v9  ;;  %v487_v20 = vld [vmem:[%s1352_s0 + $0x120] sm:$0xff]  ;;  %v491_v22 = vld [vmem:[%s1352_s0 + $0x190] sm:$0xff]  ;;  %v578_v2 = vld [vmem:[%s1352_s0 + $0xc8] sm:$0xff] }
   0xc   :  { %468 = vst [vmem:[%s1353_s1 + $0x80] sm:$0xff] %v467_v10  ;;  %v489_v21 = vld [vmem:[%s1352_s0 + $0x2e0] sm:$0xff]  ;;  %v493_v23 = vld [vmem:[%s1352_s0 + $0x350] sm:$0xff]  ;;  %v580_v3 = vld [vmem:[%s1352_s0 + $0x288] sm:$0xff] }
   0xd   :  { %470 = vst [vmem:[%s1353_s1 + $0x240] sm:$0xff] %v469_v11  ;;  %v495_v24 = vld [vmem:[%s1352_s0 + $0x30] sm:$0xff]  ;;  %v499_v26 = vld [vmem:[%s1352_s0 + $0xa0] sm:$0xff]  ;;  %v582_v4 = vld [vmem:[%s1352_s0 + $0x138] sm:$0xff] }
   0xe   :  { %472 = vst [vmem:[%s1353_s1 + $0xf0] sm:$0xff] %v471_v12  ;;  %v497_v25 = vld [vmem:[%s1352_s0 + $0x1f0] sm:$0xff]  ;;  %v501_v27 = vld [vmem:[%s1352_s0 + $0x260] sm:$0xff]  ;;  %v584_v5 = vld [vmem:[%s1352_s0 + $0x2f8] sm:$0xff] }
   0xf   :  { %474 = vst [vmem:[%s1353_s1 + $0x2b0] sm:$0xff] %v473_v13  ;;  %v503_v28 = vld [vmem:[%s1352_s0 + $0x110] sm:$0xff]  ;;  %v507_v30 = vld [vmem:[%s1352_s0 + $0x180] sm:$0xff]  ;;  %v586_v6 = vld [vmem:[%s1352_s0 + $0x1a8] sm:$0xff] }
  0x10   :  { %476 = vst [vmem:[%s1353_s1 + $0x160] sm:$0xff] %v475_v14  ;;  %v505_v29 = vld [vmem:[%s1352_s0 + $0x2d0] sm:$0xff]  ;;  %v509_v31 = vld [vmem:[%s1352_s0 + $0x340] sm:$0xff]  ;;  %v588_v7 = vld [vmem:[%s1352_s0 + $0x368] sm:$0xff] }
  0x11   :  { %478 = vst [vmem:[%s1353_s1 + $0x320] sm:$0xff] %v477_v15  ;;  %v511_v32 = vld [vmem:[%s1352_s0 + $0x20] sm:$0xff]  ;;  %v515_v34 = vld [vmem:[%s1352_s0 + $0x90] sm:$0xff]  ;;  %v590_v8 = vld [vmem:[%s1352_s0 + $0x48] sm:$0xff] }
  0x12   :  { %480 = vst [vmem:[%s1353_s1 + $0x20] sm:$0xff] %v479_v16  ;;  %v513_v33 = vld [vmem:[%s1352_s0 + $0x1e0] sm:$0xff]  ;;  %v517_v35 = vld [vmem:[%s1352_s0 + $0x250] sm:$0xff]  ;;  %v592_v9 = vld [vmem:[%s1352_s0 + $0x208] sm:$0xff] }
  0x13   :  { %482 = vst [vmem:[%s1353_s1 + $0x1e0] sm:$0xff] %v481_v17  ;;  %v519_v36 = vld [vmem:[%s1352_s0 + $0x100] sm:$0xff]  ;;  %v523_v38 = vld [vmem:[%s1352_s0 + $0x170] sm:$0xff]  ;;  %v594_v10 = vld [vmem:[%s1352_s0 + $0xb8] sm:$0xff] }
  0x14   :  { %484 = vst [vmem:[%s1353_s1 + $0x90] sm:$0xff] %v483_v18  ;;  %v521_v37 = vld [vmem:[%s1352_s0 + $0x2c0] sm:$0xff]  ;;  %v525_v39 = vld [vmem:[%s1352_s0 + $0x330] sm:$0xff]  ;;  %v596_v11 = vld [vmem:[%s1352_s0 + $0x278] sm:$0xff] }
  0x15   :  { %486 = vst [vmem:[%s1353_s1 + $0x250] sm:$0xff] %v485_v19  ;;  %v527_v40 = vld [vmem:[%s1352_s0 + $0x10] sm:$0xff]  ;;  %v531_v42 = vld [vmem:[%s1352_s0 + $0x80] sm:$0xff]  ;;  %v598_v12 = vld [vmem:[%s1352_s0 + $0x128] sm:$0xff] }
  0x16   :  { %488 = vst [vmem:[%s1353_s1 + $0x100] sm:$0xff] %v487_v20  ;;  %v529_v41 = vld [vmem:[%s1352_s0 + $0x1d0] sm:$0xff]  ;;  %v533_v43 = vld [vmem:[%s1352_s0 + $0x240] sm:$0xff]  ;;  %v600_v13 = vld [vmem:[%s1352_s0 + $0x2e8] sm:$0xff] }
  0x17   :  { %490 = vst [vmem:[%s1353_s1 + $0x2c0] sm:$0xff] %v489_v21  ;;  %v535_v44 = vld [vmem:[%s1352_s0 + $0xf0] sm:$0xff]  ;;  %v539_v46 = vld [vmem:[%s1352_s0 + $0x160] sm:$0xff]  ;;  %v602_v14 = vld [vmem:[%s1352_s0 + $0x198] sm:$0xff] }
  0x18   :  { %492 = vst [vmem:[%s1353_s1 + $0x170] sm:$0xff] %v491_v22  ;;  %v537_v45 = vld [vmem:[%s1352_s0 + $0x2b0] sm:$0xff]  ;;  %v541_v47 = vld [vmem:[%s1352_s0 + $0x320] sm:$0xff]  ;;  %v604_v15 = vld [vmem:[%s1352_s0 + $0x358] sm:$0xff] }
  0x19   :  { %494 = vst [vmem:[%s1353_s1 + $0x330] sm:$0xff] %v493_v23  ;;  %v193_v48 = vld [vmem:[%s1352_s0] sm:$0xff]  ;;  %v546_v50 = vld [vmem:[%s1352_s0 + $0x70] sm:$0xff]  ;;  %v606_v16 = vld [vmem:[%s1352_s0 + $0x38] sm:$0xff] }
  0x1a   :  { %496 = vst [vmem:[%s1353_s1 + $0x30] sm:$0xff] %v495_v24  ;;  %v544_v49 = vld [vmem:[%s1352_s0 + $0x1c0] sm:$0xff]  ;;  %v548_v51 = vld [vmem:[%s1352_s0 + $0x230] sm:$0xff]  ;;  %v608_v17 = vld [vmem:[%s1352_s0 + $0x1f8] sm:$0xff] }
  0x1b   :  { %498 = vst [vmem:[%s1353_s1 + $0x1f0] sm:$0xff] %v497_v25  ;;  %v550_v52 = vld [vmem:[%s1352_s0 + $0xe0] sm:$0xff]  ;;  %v554_v54 = vld [vmem:[%s1352_s0 + $0x150] sm:$0xff]  ;;  %v610_v18 = vld [vmem:[%s1352_s0 + $0xa8] sm:$0xff] }
  0x1c   :  { %500 = vst [vmem:[%s1353_s1 + $0xa0] sm:$0xff] %v499_v26  ;;  %v552_v53 = vld [vmem:[%s1352_s0 + $0x2a0] sm:$0xff]  ;;  %v556_v55 = vld [vmem:[%s1352_s0 + $0x310] sm:$0xff]  ;;  %v612_v19 = vld [vmem:[%s1352_s0 + $0x268] sm:$0xff] }
  0x1d   :  { %502 = vst [vmem:[%s1353_s1 + $0x260] sm:$0xff] %v501_v27  ;;  %v614_v20 = vld [vmem:[%s1352_s0 + $0x118] sm:$0xff]  ;;  %v618_v22 = vld [vmem:[%s1352_s0 + $0x188] sm:$0xff] }
  0x1e   :  { %504 = vst [vmem:[%s1353_s1 + $0x110] sm:$0xff] %v503_v28  ;;  %v616_v21 = vld [vmem:[%s1352_s0 + $0x2d8] sm:$0xff]  ;;  %v620_v23 = vld [vmem:[%s1352_s0 + $0x348] sm:$0xff] }
  0x1f   :  { %506 = vst [vmem:[%s1353_s1 + $0x2d0] sm:$0xff] %v505_v29  ;;  %v622_v24 = vld [vmem:[%s1352_s0 + $0x28] sm:$0xff]  ;;  %v626_v26 = vld [vmem:[%s1352_s0 + $0x98] sm:$0xff] }
  0x20   :  { %508 = vst [vmem:[%s1353_s1 + $0x180] sm:$0xff] %v507_v30  ;;  %v624_v25 = vld [vmem:[%s1352_s0 + $0x1e8] sm:$0xff]  ;;  %v628_v27 = vld [vmem:[%s1352_s0 + $0x258] sm:$0xff] }
  0x21   :  { %510 = vst [vmem:[%s1353_s1 + $0x340] sm:$0xff] %v509_v31  ;;  %v630_v28 = vld [vmem:[%s1352_s0 + $0x108] sm:$0xff]  ;;  %v634_v30 = vld [vmem:[%s1352_s0 + $0x178] sm:$0xff] }
  0x22   :  { %512 = vst [vmem:[%s1353_s1 + $0x40] sm:$0xff] %v511_v32  ;;  %v632_v29 = vld [vmem:[%s1352_s0 + $0x2c8] sm:$0xff]  ;;  %v636_v31 = vld [vmem:[%s1352_s0 + $0x338] sm:$0xff] }
  0x23   :  { %514 = vst [vmem:[%s1353_s1 + $0x200] sm:$0xff] %v513_v33  ;;  %v638_v32 = vld [vmem:[%s1352_s0 + $0x18] sm:$0xff] }
  0x24   :  { %516 = vst [vmem:[%s1353_s1 + $0xb0] sm:$0xff] %v515_v34  ;;  %v640_v33 = vld [vmem:[%s1352_s0 + $0x1d8] sm:$0xff]  ;;  %v642_v34 = vld [vmem:[%s1352_s0 + $0x88] sm:$0xff] }
  0x25   :  { %518 = vst [vmem:[%s1353_s1 + $0x270] sm:$0xff] %v517_v35  ;;  %v644_v35 = vld [vmem:[%s1352_s0 + $0x248] sm:$0xff] }
  0x26   :  { %520 = vst [vmem:[%s1353_s1 + $0x120] sm:$0xff] %v519_v36  ;;  %v646_v36 = vld [vmem:[%s1352_s0 + $0xf8] sm:$0xff] }
  0x27   :  { %522 = vst [vmem:[%s1353_s1 + $0x2e0] sm:$0xff] %v521_v37  ;;  %v648_v37 = vld [vmem:[%s1352_s0 + $0x2b8] sm:$0xff] }
  0x28   :  { %524 = vst [vmem:[%s1353_s1 + $0x190] sm:$0xff] %v523_v38  ;;  %v650_v38 = vld [vmem:[%s1352_s0 + $0x168] sm:$0xff] }
  0x29   :  { %526 = vst [vmem:[%s1353_s1 + $0x350] sm:$0xff] %v525_v39  ;;  %v652_v39 = vld [vmem:[%s1352_s0 + $0x328] sm:$0xff] }
  0x2a   :  { %528 = vst [vmem:[%s1353_s1 + $0x50] sm:$0xff] %v527_v40  ;;  %v654_v40 = vld [vmem:[%s1352_s0 + $0x8] sm:$0xff] }
  0x2b   :  { %530 = vst [vmem:[%s1353_s1 + $0x210] sm:$0xff] %v529_v41  ;;  %v656_v41 = vld [vmem:[%s1352_s0 + $0x1c8] sm:$0xff] }
  0x2c   :  { %532 = vst [vmem:[%s1353_s1 + $0xc0] sm:$0xff] %v531_v42  ;;  %v658_v42 = vld [vmem:[%s1352_s0 + $0x78] sm:$0xff] }
  0x2d   :  { %534 = vst [vmem:[%s1353_s1 + $0x280] sm:$0xff] %v533_v43  ;;  %v660_v43 = vld [vmem:[%s1352_s0 + $0x238] sm:$0xff] }
  0x2e   :  { %536 = vst [vmem:[%s1353_s1 + $0x130] sm:$0xff] %v535_v44  ;;  %v662_v44 = vld [vmem:[%s1352_s0 + $0xe8] sm:$0xff] }
  0x2f   :  { %538 = vst [vmem:[%s1353_s1 + $0x2f0] sm:$0xff] %v537_v45  ;;  %v664_v45 = vld [vmem:[%s1352_s0 + $0x2a8] sm:$0xff] }
  0x30   :  { %540 = vst [vmem:[%s1353_s1 + $0x1a0] sm:$0xff] %v539_v46  ;;  %v666_v46 = vld [vmem:[%s1352_s0 + $0x158] sm:$0xff] }
  0x31   :  { %542 = vst [vmem:[%s1353_s1 + $0x360] sm:$0xff] %v541_v47  ;;  %v668_v47 = vld [vmem:[%s1352_s0 + $0x318] sm:$0xff] }
  0x32   :  { %543 = vst [vmem:[%s1353_s1 + $0x60] sm:$0xff] %v193_v48 }
  0x33   :  { %545 = vst [vmem:[%s1353_s1 + $0x220] sm:$0xff] %v544_v49 }
  0x34   :  { %547 = vst [vmem:[%s1353_s1 + $0xd0] sm:$0xff] %v546_v50 }
  0x35   :  { %549 = vst [vmem:[%s1353_s1 + $0x290] sm:$0xff] %v548_v51 }
  0x36   :  { %551 = vst [vmem:[%s1353_s1 + $0x140] sm:$0xff] %v550_v52 }
  0x37   :  { %553 = vst [vmem:[%s1353_s1 + $0x300] sm:$0xff] %v552_v53 }
  0x38   :  { %555 = vst [vmem:[%s1353_s1 + $0x1b0] sm:$0xff] %v554_v54 }
  0x39   :  { %557 = vst [vmem:[%s1353_s1 + $0x370] sm:$0xff] %v556_v55 }
  0x3a   :  { %559 = vst [vmem:[%s1353_s1 + $0x8] sm:$0xff] %v558_v56 }
  0x3b   :  { %561 = vst [vmem:[%s1353_s1 + $0x1c8] sm:$0xff] %v560_v57 }
  0x3c   :  { %563 = vst [vmem:[%s1353_s1 + $0x78] sm:$0xff] %v562_v58 }
  0x3d   :  { %565 = vst [vmem:[%s1353_s1 + $0x238] sm:$0xff] %v564_v59 }
  0x3e   :  { %567 = vst [vmem:[%s1353_s1 + $0xe8] sm:$0xff] %v566_v60 }
  0x3f   :  { %569 = vst [vmem:[%s1353_s1 + $0x2a8] sm:$0xff] %v568_v61 }
  0x40   :  { %571 = vst [vmem:[%s1353_s1 + $0x158] sm:$0xff] %v570_v62 }
  0x41   :  { %573 = vst [vmem:[%s1353_s1 + $0x318] sm:$0xff] %v572_v63 }
  0x42   :  { %575 = vst [vmem:[%s1353_s1 + $0x18] sm:$0xff] %v574_v0 }
  0x43   :  { %577 = vst [vmem:[%s1353_s1 + $0x1d8] sm:$0xff] %v576_v1 }
  0x44   :  { %579 = vst [vmem:[%s1353_s1 + $0x88] sm:$0xff] %v578_v2 }
  0x45   :  { %581 = vst [vmem:[%s1353_s1 + $0x248] sm:$0xff] %v580_v3 }
  0x46   :  { %583 = vst [vmem:[%s1353_s1 + $0xf8] sm:$0xff] %v582_v4 }
  0x47   :  { %585 = vst [vmem:[%s1353_s1 + $0x2b8] sm:$0xff] %v584_v5 }
  0x48   :  { %587 = vst [vmem:[%s1353_s1 + $0x168] sm:$0xff] %v586_v6 }
  0x49   :  { %589 = vst [vmem:[%s1353_s1 + $0x328] sm:$0xff] %v588_v7 }
  0x4a   :  { %591 = vst [vmem:[%s1353_s1 + $0x28] sm:$0xff] %v590_v8 }
  0x4b   :  { %593 = vst [vmem:[%s1353_s1 + $0x1e8] sm:$0xff] %v592_v9 }
  0x4c   :  { %595 = vst [vmem:[%s1353_s1 + $0x98] sm:$0xff] %v594_v10 }
  0x4d   :  { %597 = vst [vmem:[%s1353_s1 + $0x258] sm:$0xff] %v596_v11 }
  0x4e   :  { %599 = vst [vmem:[%s1353_s1 + $0x108] sm:$0xff] %v598_v12 }
  0x4f   :  { %601 = vst [vmem:[%s1353_s1 + $0x2c8] sm:$0xff] %v600_v13 }
  0x50   :  { %603 = vst [vmem:[%s1353_s1 + $0x178] sm:$0xff] %v602_v14 }
  0x51   :  { %605 = vst [vmem:[%s1353_s1 + $0x338] sm:$0xff] %v604_v15 }
  0x52   :  { %607 = vst [vmem:[%s1353_s1 + $0x38] sm:$0xff] %v606_v16 }
  0x53   :  { %609 = vst [vmem:[%s1353_s1 + $0x1f8] sm:$0xff] %v608_v17 }
  0x54   :  { %611 = vst [vmem:[%s1353_s1 + $0xa8] sm:$0xff] %v610_v18 }
  0x55   :  { %613 = vst [vmem:[%s1353_s1 + $0x268] sm:$0xff] %v612_v19 }
  0x56   :  { %615 = vst [vmem:[%s1353_s1 + $0x118] sm:$0xff] %v614_v20 }
  0x57   :  { %617 = vst [vmem:[%s1353_s1 + $0x2d8] sm:$0xff] %v616_v21 }
  0x58   :  { %619 = vst [vmem:[%s1353_s1 + $0x188] sm:$0xff] %v618_v22 }
  0x59   :  { %621 = vst [vmem:[%s1353_s1 + $0x348] sm:$0xff] %v620_v23 }
  0x5a   :  { %623 = vst [vmem:[%s1353_s1 + $0x48] sm:$0xff] %v622_v24 }
  0x5b   :  { %625 = vst [vmem:[%s1353_s1 + $0x208] sm:$0xff] %v624_v25 }
  0x5c   :  { %627 = vst [vmem:[%s1353_s1 + $0xb8] sm:$0xff] %v626_v26 }
  0x5d   :  { %629 = vst [vmem:[%s1353_s1 + $0x278] sm:$0xff] %v628_v27 }
  0x5e   :  { %631 = vst [vmem:[%s1353_s1 + $0x128] sm:$0xff] %v630_v28 }
  0x5f   :  { %633 = vst [vmem:[%s1353_s1 + $0x2e8] sm:$0xff] %v632_v29 }
  0x60   :  { %635 = vst [vmem:[%s1353_s1 + $0x198] sm:$0xff] %v634_v30 }
  0x61   :  { %637 = vst [vmem:[%s1353_s1 + $0x358] sm:$0xff] %v636_v31 }
  0x62   :  { %639 = vst [vmem:[%s1353_s1 + $0x58] sm:$0xff] %v638_v32 }
  0x63   :  { %641 = vst [vmem:[%s1353_s1 + $0x218] sm:$0xff] %v640_v33 }
  0x64   :  { %643 = vst [vmem:[%s1353_s1 + $0xc8] sm:$0xff] %v642_v34 }
  0x65   :  { %645 = vst [vmem:[%s1353_s1 + $0x288] sm:$0xff] %v644_v35 }
  0x66   :  { %647 = vst [vmem:[%s1353_s1 + $0x138] sm:$0xff] %v646_v36 }
  0x67   :  { %649 = vst [vmem:[%s1353_s1 + $0x2f8] sm:$0xff] %v648_v37 }
  0x68   :  { %651 = vst [vmem:[%s1353_s1 + $0x1a8] sm:$0xff] %v650_v38 }
  0x69   :  { %653 = vst [vmem:[%s1353_s1 + $0x368] sm:$0xff] %v652_v39 }
  0x6a   :  { %655 = vst [vmem:[%s1353_s1 + $0x68] sm:$0xff] %v654_v40 }
  0x6b   :  { %657 = vst [vmem:[%s1353_s1 + $0x228] sm:$0xff] %v656_v41 }
  0x6c   :  { %659 = vst [vmem:[%s1353_s1 + $0xd8] sm:$0xff] %v658_v42 }
  0x6d   :  { %661 = vst [vmem:[%s1353_s1 + $0x298] sm:$0xff] %v660_v43 }
  0x6e   :  { %663 = vst [vmem:[%s1353_s1 + $0x148] sm:$0xff] %v662_v44 }
  0x6f   :  { %665 = vst [vmem:[%s1353_s1 + $0x308] sm:$0xff] %v664_v45 }
  0x70   :  { %667 = vst [vmem:[%s1353_s1 + $0x1b8] sm:$0xff] %v666_v46 }
  0x71   :  { %669 = vst [vmem:[%s1353_s1 + $0x378] sm:$0xff] %v668_v47 }

</bundles_post_ra>
